<compile_context>
chip_gen: v5e
topology: v5e:2x2
jax: 0.10.0
libtpu: 0.0.40
codegen_flags: <defaults>
</compile_context>

<pallas_src>
import functools

import jax
import jax.numpy as jnp
from jax.experimental import pallas as pl
from jax.experimental.pallas import tpu as pltpu


def _dlstm_kernel(h0_ref, c0_ref, wih_ref, whh_ref, b_ref, wr_ref, br_ref,
                  out_ref):
    num_layers, batch, hidden = h0_ref.shape
    seq_len = out_ref.shape[0] // batch

    # Per-layer bias, pre-broadcast to (B, 4H) once, NOT inside the unrolled
    # loop (JAX does not CSE broadcast_in_dim).  The i/f/o gate columns were
    # already scaled by 0.5 in the wrapper (tanh-only sigmoid trick).
    bias = [jnp.broadcast_to(b_ref[l], (batch, 4 * hidden))
            for l in range(num_layers)]

    # Loop-carried state lives in vregs.  c stays f32 (it accumulates);
    # h is kept in bf16 because its only consumers are bf16 MXU operands
    # (recurrent input, next-layer input, deferred recons).
    x = jnp.zeros((batch, hidden), jnp.bfloat16)
    h = [h0_ref[l].astype(jnp.bfloat16) for l in range(num_layers)]
    c = [c0_ref[l] for l in range(num_layers)]

    hs = []  # f32 top-layer outputs, one per time step (newest last)
    for _ in range(seq_len):
        inp = x
        h_f32 = None
        for l in range(num_layers):
            # Weights read at the use site: the vld hides under MXU latency
            # and nothing is pinned in vregs across the whole unroll.
            gates = (
                jnp.dot(inp, wih_ref[l], preferred_element_type=jnp.float32)
                + jnp.dot(h[l], whh_ref[l], preferred_element_type=jnp.float32)
                + bias[l]
            )  # (B, 4H) f32, PyTorch gate order (i, f, g, o)

            # One EUP launch for all four gates; sigmoid(z) = 0.5*tanh(z/2)+0.5
            # (the /2 on z is already folded into the i/f/o weight columns).
            t_all = jnp.tanh(gates)
            s_all = 0.5 * t_all + 0.5
            # NOTE: f/g/o slices sit at 32-lane offsets relative to c/h (lane
            # 0) and may lower to XLU rotates; a feature-major (H, B) layout
            # would make them sublane-aligned but wastes 126/128 lanes at B=2.
            i_g = s_all[:, 0 * hidden:1 * hidden]
            f_g = s_all[:, 1 * hidden:2 * hidden]
            g_g = t_all[:, 2 * hidden:3 * hidden]
            o_g = s_all[:, 3 * hidden:4 * hidden]

            c_new = f_g * c[l] + i_g * g_g            # f32
            h_f32 = o_g * jnp.tanh(c_new)             # f32
            h_bf = h_f32.astype(jnp.bfloat16)
            c[l] = c_new
            h[l] = h_bf
            inp = h_bf
        x = inp               # top-layer output feeds the next step's layer 0
        hs.append(h_f32)      # f32 copy of the top-layer h_t (last inner iter)

    # Deferred recons Linear + folded torch.flip: one batched matmul and one
    # store instead of seq_len tiny (B, H) dots and masked per-step stores.
    h_all = jnp.concatenate(hs[::-1], axis=0).astype(jnp.bfloat16)  # (T*B, H)
    y = (jnp.dot(h_all, wr_ref[...], preferred_element_type=jnp.float32)
         + br_ref[...])                                             # (T*B, I)
    out_ref[...] = y.astype(out_ref.dtype)


@functools.partial(jax.jit, static_argnums=0)
def dlstm_forward(seq_len, h_0, c_0, params):
    """Pallas equivalent of dLSTM.forward(seq_len, h_0, c_0)."""
    wih, whh, b, wr, br = params
    num_layers, batch, hidden = h_0.shape
    input_size = wr.shape[1]

    # Fold sigmoid -> tanh: scale the i/f/o gate columns (PyTorch order
    # i, f, g, o) of W_ih, W_hh and the bias by 0.5 so the kernel can use
    # sigmoid(z) = 0.5 * tanh(z/2) + 0.5 with a single tanh per layer-step.
    gate_scale = jnp.concatenate([
        jnp.full((hidden,), 0.5, jnp.float32),
        jnp.full((hidden,), 0.5, jnp.float32),
        jnp.ones((hidden,), jnp.float32),
        jnp.full((hidden,), 0.5, jnp.float32),
    ])
    wih_s = (wih * gate_scale).astype(jnp.bfloat16)   # (L, H, 4H) MXU operand
    whh_s = (whh * gate_scale).astype(jnp.bfloat16)   # (L, H, 4H)
    b_s = (b * gate_scale).astype(jnp.float32)        # (L, 1, 4H) stays f32
    wr_b = wr.astype(jnp.bfloat16)                    # (H, I)

    vmem = pl.BlockSpec(memory_space=pltpu.MemorySpace.VMEM)
    # Single grid-less call; everything (~0.1 MiB) VMEM-resident, no grid.
    # NOTE: to use both v7x TensorCores, batch independent decodes into this
    # kernel's batch dim or add a leading "parallel" grid axis over sequences.
    out = pl.pallas_call(
        _dlstm_kernel,
        out_shape=jax.ShapeDtypeStruct((seq_len * batch, input_size),
                                       jnp.float32),
        in_specs=[vmem] * 7,
        out_specs=vmem,
    )(h_0, c_0, wih_s, whh_s, b_s, wr_b, br)
    return out.reshape(seq_len, batch, input_size)


def dlstm_reference(seq_len, h_0, c_0, params):
    """Pure-JAX f32 reference matching the PyTorch semantics."""
    wih, whh, b, wr, br = params
    num_layers, batch, hidden = h_0.shape
    x = jnp.zeros((batch, hidden), jnp.float32)
    h, c = h_0, c_0
    outs = []
    for _ in range(seq_len):
        inp = x
        h_new, c_new = [], []
        for l in range(num_layers):
            gates = inp @ wih[l] + h[l] @ whh[l] + b[l]
            i_g = jax.nn.sigmoid(gates[:, 0 * hidden:1 * hidden])
            f_g = jax.nn.sigmoid(gates[:, 1 * hidden:2 * hidden])
            g_g = jnp.tanh(gates[:, 2 * hidden:3 * hidden])
            o_g = jax.nn.sigmoid(gates[:, 3 * hidden:4 * hidden])
            cn = f_g * c[l] + i_g * g_g
            hn = o_g * jnp.tanh(cn)
            h_new.append(hn)
            c_new.append(cn)
            inp = hn
        h = jnp.stack(h_new)
        c = jnp.stack(c_new)
        x = inp
        outs.append(x @ wr + br)
    x_hat = jnp.stack(outs, axis=0)      # (seq_len, B, I)
    return x_hat[::-1]                   # torch.flip(., (0,))


if __name__ == "__main__":
    # Small shapes consistent with the module: input_size=64, hidden_size=32,
    # num_layers=2, batch=2, seq_len=8.
    input_size, hidden, num_layers = 64, 32, 2
    batch, seq_len = 2, 8

    key = jax.random.PRNGKey(0)
    ks = jax.random.split(key, 7)

    # Deterministic synthetic parameters (PyTorch shapes, pre-transposed for x @ W).
    wih = 0.1 * jax.random.normal(ks[0], (num_layers, hidden, 4 * hidden), jnp.float32)
    whh = 0.1 * jax.random.normal(ks[1], (num_layers, hidden, 4 * hidden), jnp.float32)
    b_ih = 0.1 * jax.random.normal(ks[2], (num_layers, 1, 4 * hidden), jnp.float32)
    b_hh = 0.1 * jax.random.normal(ks[3], (num_layers, 1, 4 * hidden), jnp.float32)
    b = b_ih + b_hh                                   # combined bias (L, 1, 4H)
    wr = 0.1 * jax.random.normal(ks[4], (hidden, input_size), jnp.float32)
    br = 0.1 * jax.random.normal(ks[5], (1, input_size), jnp.float32)
    params = (wih, whh, b, wr, br)

    h_0 = jax.random.normal(ks[6], (num_layers, batch, hidden), jnp.float32)
    c_0 = jax.random.normal(jax.random.fold_in(key, 99),
                            (num_layers, batch, hidden), jnp.float32)

    x_hat = dlstm_forward(seq_len, h_0, c_0, params)
    x_hat = jax.block_until_ready(x_hat)

    x_ref = dlstm_reference(seq_len, h_0, c_0, params)
    assert x_hat.shape == (seq_len, batch, input_size)
    # Tolerance sized for bf16 MXU operands (f32 accumulation, f32 gate math).
    assert jnp.allclose(x_hat, x_ref, atol=1e-2, rtol=1e-2)

    print("KERNEL_OK")
</pallas_src>

<mosaic_0001>
module attributes {stable_mosaic.version = 11 : i64} {
  func.func @_dlstm_kernel(%arg0: memref<2x2x32xf32, #tpu.memory_space<vmem>>, %arg1: memref<2x2x32xf32, #tpu.memory_space<vmem>>, %arg2: memref<2x32x128xbf16, #tpu.memory_space<vmem>>, %arg3: memref<2x32x128xbf16, #tpu.memory_space<vmem>>, %arg4: memref<2x1x128xf32, #tpu.memory_space<vmem>>, %arg5: memref<32x64xbf16, #tpu.memory_space<vmem>>, %arg6: memref<1x64xf32, #tpu.memory_space<vmem>>, %arg7: memref<16x64xf32, #tpu.memory_space<vmem>>) attributes {dimension_semantics = [], scalar_prefetch = 0 : i64, scratch_operands = 0 : i64, tpu.core_type = #tpu.core_type<tc>} {
    %c0 = arith.constant 0 : index
    %c0_0 = arith.constant 0 : index
    %c0_1 = arith.constant 0 : index
    %0 = vector.load %arg4[%c0, %c0_0, %c0_1] : memref<2x1x128xf32, #tpu.memory_space<vmem>>, vector<1x1x128xf32>
    %1 = vector.shape_cast %0 : vector<1x1x128xf32> to vector<1x128xf32>
    %2 = vector.shape_cast %1 : vector<1x128xf32> to vector<1x128xf32>
    %3 = vector.broadcast %2 : vector<1x128xf32> to vector<2x128xf32>
    %c1 = arith.constant 1 : index
    %c0_2 = arith.constant 0 : index
    %c0_3 = arith.constant 0 : index
    %4 = vector.load %arg4[%c1, %c0_2, %c0_3] : memref<2x1x128xf32, #tpu.memory_space<vmem>>, vector<1x1x128xf32>
    %5 = vector.shape_cast %4 : vector<1x1x128xf32> to vector<1x128xf32>
    %6 = vector.shape_cast %5 : vector<1x128xf32> to vector<1x128xf32>
    %7 = vector.broadcast %6 : vector<1x128xf32> to vector<2x128xf32>
    %cst = arith.constant 0.000000e+00 : bf16
    %8 = vector.broadcast %cst : bf16 to vector<2x32xbf16>
    %c0_4 = arith.constant 0 : index
    %c0_5 = arith.constant 0 : index
    %c0_6 = arith.constant 0 : index
    %9 = vector.load %arg0[%c0_4, %c0_5, %c0_6] : memref<2x2x32xf32, #tpu.memory_space<vmem>>, vector<1x2x32xf32>
    %10 = vector.shape_cast %9 : vector<1x2x32xf32> to vector<2x32xf32>
    %11 = arith.truncf %10 : vector<2x32xf32> to vector<2x32xbf16>
    %c1_7 = arith.constant 1 : index
    %c0_8 = arith.constant 0 : index
    %c0_9 = arith.constant 0 : index
    %12 = vector.load %arg0[%c1_7, %c0_8, %c0_9] : memref<2x2x32xf32, #tpu.memory_space<vmem>>, vector<1x2x32xf32>
    %13 = vector.shape_cast %12 : vector<1x2x32xf32> to vector<2x32xf32>
    %14 = arith.truncf %13 : vector<2x32xf32> to vector<2x32xbf16>
    %c0_10 = arith.constant 0 : index
    %c0_11 = arith.constant 0 : index
    %c0_12 = arith.constant 0 : index
    %15 = vector.load %arg1[%c0_10, %c0_11, %c0_12] : memref<2x2x32xf32, #tpu.memory_space<vmem>>, vector<1x2x32xf32>
    %16 = vector.shape_cast %15 : vector<1x2x32xf32> to vector<2x32xf32>
    %c1_13 = arith.constant 1 : index
    %c0_14 = arith.constant 0 : index
    %c0_15 = arith.constant 0 : index
    %17 = vector.load %arg1[%c1_13, %c0_14, %c0_15] : memref<2x2x32xf32, #tpu.memory_space<vmem>>, vector<1x2x32xf32>
    %18 = vector.shape_cast %17 : vector<1x2x32xf32> to vector<2x32xf32>
    %c0_16 = arith.constant 0 : index
    %c0_17 = arith.constant 0 : index
    %c0_18 = arith.constant 0 : index
    %19 = vector.load %arg2[%c0_16, %c0_17, %c0_18] : memref<2x32x128xbf16, #tpu.memory_space<vmem>>, vector<1x32x128xbf16>
    %20 = vector.shape_cast %19 : vector<1x32x128xbf16> to vector<32x128xbf16>
    %cst_19 = arith.constant dense<0.000000e+00> : vector<2x128xf32>
    %21 = tpu.matmul %8, %20, %cst_19 {dimension_numbers = #tpu.dot_dimension_numbers<[1], [0], [0], [1], [0, 0, 1, 1], [], []>} : vector<2x32xbf16>, vector<32x128xbf16>, vector<2x128xf32> -> vector<2x128xf32>
    %c0_20 = arith.constant 0 : index
    %c0_21 = arith.constant 0 : index
    %c0_22 = arith.constant 0 : index
    %22 = vector.load %arg3[%c0_20, %c0_21, %c0_22] : memref<2x32x128xbf16, #tpu.memory_space<vmem>>, vector<1x32x128xbf16>
    %23 = vector.shape_cast %22 : vector<1x32x128xbf16> to vector<32x128xbf16>
    %cst_23 = arith.constant dense<0.000000e+00> : vector<2x128xf32>
    %24 = tpu.matmul %11, %23, %cst_23 {dimension_numbers = #tpu.dot_dimension_numbers<[1], [0], [0], [1], [0, 0, 1, 1], [], []>} : vector<2x32xbf16>, vector<32x128xbf16>, vector<2x128xf32> -> vector<2x128xf32>
    %25 = arith.addf %21, %24 : vector<2x128xf32>
    %26 = arith.addf %25, %3 : vector<2x128xf32>
    %27 = math.tanh %26 : vector<2x128xf32>
    %cst_24 = arith.constant 5.000000e-01 : f32
    %28 = vector.broadcast %cst_24 : f32 to vector<2x128xf32>
    %29 = arith.mulf %28, %27 : vector<2x128xf32>
    %cst_25 = arith.constant 5.000000e-01 : f32
    %30 = vector.broadcast %cst_25 : f32 to vector<2x128xf32>
    %31 = arith.addf %29, %30 : vector<2x128xf32>
    %32 = vector.extract_strided_slice %31 {offsets = [0, 0], sizes = [2, 32], strides = [1, 1]} : vector<2x128xf32> to vector<2x32xf32>
    %33 = vector.extract_strided_slice %31 {offsets = [0, 32], sizes = [2, 32], strides = [1, 1]} : vector<2x128xf32> to vector<2x32xf32>
    %34 = vector.extract_strided_slice %27 {offsets = [0, 64], sizes = [2, 32], strides = [1, 1]} : vector<2x128xf32> to vector<2x32xf32>
    %35 = vector.extract_strided_slice %31 {offsets = [0, 96], sizes = [2, 32], strides = [1, 1]} : vector<2x128xf32> to vector<2x32xf32>
    %36 = arith.mulf %33, %16 : vector<2x32xf32>
    %37 = arith.mulf %32, %34 : vector<2x32xf32>
    %38 = arith.addf %36, %37 : vector<2x32xf32>
    %39 = math.tanh %38 : vector<2x32xf32>
    %40 = arith.mulf %35, %39 : vector<2x32xf32>
    %41 = arith.truncf %40 : vector<2x32xf32> to vector<2x32xbf16>
    %c1_26 = arith.constant 1 : index
    %c0_27 = arith.constant 0 : index
    %c0_28 = arith.constant 0 : index
    %42 = vector.load %arg2[%c1_26, %c0_27, %c0_28] : memref<2x32x128xbf16, #tpu.memory_space<vmem>>, vector<1x32x128xbf16>
    %43 = vector.shape_cast %42 : vector<1x32x128xbf16> to vector<32x128xbf16>
    %cst_29 = arith.constant dense<0.000000e+00> : vector<2x128xf32>
    %44 = tpu.matmul %41, %43, %cst_29 {dimension_numbers = #tpu.dot_dimension_numbers<[1], [0], [0], [1], [0, 0, 1, 1], [], []>} : vector<2x32xbf16>, vector<32x128xbf16>, vector<2x128xf32> -> vector<2x128xf32>
    %c1_30 = arith.constant 1 : index
    %c0_31 = arith.constant 0 : index
    %c0_32 = arith.constant 0 : index
    %45 = vector.load %arg3[%c1_30, %c0_31, %c0_32] : memref<2x32x128xbf16, #tpu.memory_space<vmem>>, vector<1x32x128xbf16>
    %46 = vector.shape_cast %45 : vector<1x32x128xbf16> to vector<32x128xbf16>
    %cst_33 = arith.constant dense<0.000000e+00> : vector<2x128xf32>
    %47 = tpu.matmul %14, %46, %cst_33 {dimension_numbers = #tpu.dot_dimension_numbers<[1], [0], [0], [1], [0, 0, 1, 1], [], []>} : vector<2x32xbf16>, vector<32x128xbf16>, vector<2x128xf32> -> vector<2x128xf32>
    %48 = arith.addf %44, %47 : vector<2x128xf32>
    %49 = arith.addf %48, %7 : vector<2x128xf32>
    %50 = math.tanh %49 : vector<2x128xf32>
    %cst_34 = arith.constant 5.000000e-01 : f32
    %51 = vector.broadcast %cst_34 : f32 to vector<2x128xf32>
    %52 = arith.mulf %51, %50 : vector<2x128xf32>
    %cst_35 = arith.constant 5.000000e-01 : f32
    %53 = vector.broadcast %cst_35 : f32 to vector<2x128xf32>
    %54 = arith.addf %52, %53 : vector<2x128xf32>
    %55 = vector.extract_strided_slice %54 {offsets = [0, 0], sizes = [2, 32], strides = [1, 1]} : vector<2x128xf32> to vector<2x32xf32>
    %56 = vector.extract_strided_slice %54 {offsets = [0, 32], sizes = [2, 32], strides = [1, 1]} : vector<2x128xf32> to vector<2x32xf32>
    %57 = vector.extract_strided_slice %50 {offsets = [0, 64], sizes = [2, 32], strides = [1, 1]} : vector<2x128xf32> to vector<2x32xf32>
    %58 = vector.extract_strided_slice %54 {offsets = [0, 96], sizes = [2, 32], strides = [1, 1]} : vector<2x128xf32> to vector<2x32xf32>
    %59 = arith.mulf %56, %18 : vector<2x32xf32>
    %60 = arith.mulf %55, %57 : vector<2x32xf32>
    %61 = arith.addf %59, %60 : vector<2x32xf32>
    %62 = math.tanh %61 : vector<2x32xf32>
    %63 = arith.mulf %58, %62 : vector<2x32xf32>
    %64 = arith.truncf %63 : vector<2x32xf32> to vector<2x32xbf16>
    %c0_36 = arith.constant 0 : index
    %c0_37 = arith.constant 0 : index
    %c0_38 = arith.constant 0 : index
    %65 = vector.load %arg2[%c0_36, %c0_37, %c0_38] : memref<2x32x128xbf16, #tpu.memory_space<vmem>>, vector<1x32x128xbf16>
    %66 = vector.shape_cast %65 : vector<1x32x128xbf16> to vector<32x128xbf16>
    %cst_39 = arith.constant dense<0.000000e+00> : vector<2x128xf32>
    %67 = tpu.matmul %64, %66, %cst_39 {dimension_numbers = #tpu.dot_dimension_numbers<[1], [0], [0], [1], [0, 0, 1, 1], [], []>} : vector<2x32xbf16>, vector<32x128xbf16>, vector<2x128xf32> -> vector<2x128xf32>
    %c0_40 = arith.constant 0 : index
    %c0_41 = arith.constant 0 : index
    %c0_42 = arith.constant 0 : index
    %68 = vector.load %arg3[%c0_40, %c0_41, %c0_42] : memref<2x32x128xbf16, #tpu.memory_space<vmem>>, vector<1x32x128xbf16>
    %69 = vector.shape_cast %68 : vector<1x32x128xbf16> to vector<32x128xbf16>
    %cst_43 = arith.constant dense<0.000000e+00> : vector<2x128xf32>
    %70 = tpu.matmul %41, %69, %cst_43 {dimension_numbers = #tpu.dot_dimension_numbers<[1], [0], [0], [1], [0, 0, 1, 1], [], []>} : vector<2x32xbf16>, vector<32x128xbf16>, vector<2x128xf32> -> vector<2x128xf32>
    %71 = arith.addf %67, %70 : vector<2x128xf32>
    %72 = arith.addf %71, %3 : vector<2x128xf32>
    %73 = math.tanh %72 : vector<2x128xf32>
    %cst_44 = arith.constant 5.000000e-01 : f32
    %74 = vector.broadcast %cst_44 : f32 to vector<2x128xf32>
    %75 = arith.mulf %74, %73 : vector<2x128xf32>
    %cst_45 = arith.constant 5.000000e-01 : f32
    %76 = vector.broadcast %cst_45 : f32 to vector<2x128xf32>
    %77 = arith.addf %75, %76 : vector<2x128xf32>
    %78 = vector.extract_strided_slice %77 {offsets = [0, 0], sizes = [2, 32], strides = [1, 1]} : vector<2x128xf32> to vector<2x32xf32>
    %79 = vector.extract_strided_slice %77 {offsets = [0, 32], sizes = [2, 32], strides = [1, 1]} : vector<2x128xf32> to vector<2x32xf32>
    %80 = vector.extract_strided_slice %73 {offsets = [0, 64], sizes = [2, 32], strides = [1, 1]} : vector<2x128xf32> to vector<2x32xf32>
    %81 = vector.extract_strided_slice %77 {offsets = [0, 96], sizes = [2, 32], strides = [1, 1]} : vector<2x128xf32> to vector<2x32xf32>
    %82 = arith.mulf %79, %38 : vector<2x32xf32>
    %83 = arith.mulf %78, %80 : vector<2x32xf32>
    %84 = arith.addf %82, %83 : vector<2x32xf32>
    %85 = math.tanh %84 : vector<2x32xf32>
    %86 = arith.mulf %81, %85 : vector<2x32xf32>
    %87 = arith.truncf %86 : vector<2x32xf32> to vector<2x32xbf16>
    %c1_46 = arith.constant 1 : index
    %c0_47 = arith.constant 0 : index
    %c0_48 = arith.constant 0 : index
    %88 = vector.load %arg2[%c1_46, %c0_47, %c0_48] : memref<2x32x128xbf16, #tpu.memory_space<vmem>>, vector<1x32x128xbf16>
    %89 = vector.shape_cast %88 : vector<1x32x128xbf16> to vector<32x128xbf16>
    %cst_49 = arith.constant dense<0.000000e+00> : vector<2x128xf32>
    %90 = tpu.matmul %87, %89, %cst_49 {dimension_numbers = #tpu.dot_dimension_numbers<[1], [0], [0], [1], [0, 0, 1, 1], [], []>} : vector<2x32xbf16>, vector<32x128xbf16>, vector<2x128xf32> -> vector<2x128xf32>
    %c1_50 = arith.constant 1 : index
    %c0_51 = arith.constant 0 : index
    %c0_52 = arith.constant 0 : index
    %91 = vector.load %arg3[%c1_50, %c0_51, %c0_52] : memref<2x32x128xbf16, #tpu.memory_space<vmem>>, vector<1x32x128xbf16>
    %92 = vector.shape_cast %91 : vector<1x32x128xbf16> to vector<32x128xbf16>
    %cst_53 = arith.constant dense<0.000000e+00> : vector<2x128xf32>
    %93 = tpu.matmul %64, %92, %cst_53 {dimension_numbers = #tpu.dot_dimension_numbers<[1], [0], [0], [1], [0, 0, 1, 1], [], []>} : vector<2x32xbf16>, vector<32x128xbf16>, vector<2x128xf32> -> vector<2x128xf32>
    %94 = arith.addf %90, %93 : vector<2x128xf32>
    %95 = arith.addf %94, %7 : vector<2x128xf32>
    %96 = math.tanh %95 : vector<2x128xf32>
    %cst_54 = arith.constant 5.000000e-01 : f32
    %97 = vector.broadcast %cst_54 : f32 to vector<2x128xf32>
    %98 = arith.mulf %97, %96 : vector<2x128xf32>
    %cst_55 = arith.constant 5.000000e-01 : f32
    %99 = vector.broadcast %cst_55 : f32 to vector<2x128xf32>
    %100 = arith.addf %98, %99 : vector<2x128xf32>
    %101 = vector.extract_strided_slice %100 {offsets = [0, 0], sizes = [2, 32], strides = [1, 1]} : vector<2x128xf32> to vector<2x32xf32>
    %102 = vector.extract_strided_slice %100 {offsets = [0, 32], sizes = [2, 32], strides = [1, 1]} : vector<2x128xf32> to vector<2x32xf32>
    %103 = vector.extract_strided_slice %96 {offsets = [0, 64], sizes = [2, 32], strides = [1, 1]} : vector<2x128xf32> to vector<2x32xf32>
    %104 = vector.extract_strided_slice %100 {offsets = [0, 96], sizes = [2, 32], strides = [1, 1]} : vector<2x128xf32> to vector<2x32xf32>
    %105 = arith.mulf %102, %61 : vector<2x32xf32>
    %106 = arith.mulf %101, %103 : vector<2x32xf32>
    %107 = arith.addf %105, %106 : vector<2x32xf32>
    %108 = math.tanh %107 : vector<2x32xf32>
    %109 = arith.mulf %104, %108 : vector<2x32xf32>
    %110 = arith.truncf %109 : vector<2x32xf32> to vector<2x32xbf16>
    %c0_56 = arith.constant 0 : index
    %c0_57 = arith.constant 0 : index
    %c0_58 = arith.constant 0 : index
    %111 = vector.load %arg2[%c0_56, %c0_57, %c0_58] : memref<2x32x128xbf16, #tpu.memory_space<vmem>>, vector<1x32x128xbf16>
    %112 = vector.shape_cast %111 : vector<1x32x128xbf16> to vector<32x128xbf16>
    %cst_59 = arith.constant dense<0.000000e+00> : vector<2x128xf32>
    %113 = tpu.matmul %110, %112, %cst_59 {dimension_numbers = #tpu.dot_dimension_numbers<[1], [0], [0], [1], [0, 0, 1, 1], [], []>} : vector<2x32xbf16>, vector<32x128xbf16>, vector<2x128xf32> -> vector<2x128xf32>
    %c0_60 = arith.constant 0 : index
    %c0_61 = arith.constant 0 : index
    %c0_62 = arith.constant 0 : index
    %114 = vector.load %arg3[%c0_60, %c0_61, %c0_62] : memref<2x32x128xbf16, #tpu.memory_space<vmem>>, vector<1x32x128xbf16>
    %115 = vector.shape_cast %114 : vector<1x32x128xbf16> to vector<32x128xbf16>
    %cst_63 = arith.constant dense<0.000000e+00> : vector<2x128xf32>
    %116 = tpu.matmul %87, %115, %cst_63 {dimension_numbers = #tpu.dot_dimension_numbers<[1], [0], [0], [1], [0, 0, 1, 1], [], []>} : vector<2x32xbf16>, vector<32x128xbf16>, vector<2x128xf32> -> vector<2x128xf32>
    %117 = arith.addf %113, %116 : vector<2x128xf32>
    %118 = arith.addf %117, %3 : vector<2x128xf32>
    %119 = math.tanh %118 : vector<2x128xf32>
    %cst_64 = arith.constant 5.000000e-01 : f32
    %120 = vector.broadcast %cst_64 : f32 to vector<2x128xf32>
    %121 = arith.mulf %120, %119 : vector<2x128xf32>
    %cst_65 = arith.constant 5.000000e-01 : f32
    %122 = vector.broadcast %cst_65 : f32 to vector<2x128xf32>
    %123 = arith.addf %121, %122 : vector<2x128xf32>
    %124 = vector.extract_strided_slice %123 {offsets = [0, 0], sizes = [2, 32], strides = [1, 1]} : vector<2x128xf32> to vector<2x32xf32>
    %125 = vector.extract_strided_slice %123 {offsets = [0, 32], sizes = [2, 32], strides = [1, 1]} : vector<2x128xf32> to vector<2x32xf32>
    %126 = vector.extract_strided_slice %119 {offsets = [0, 64], sizes = [2, 32], strides = [1, 1]} : vector<2x128xf32> to vector<2x32xf32>
    %127 = vector.extract_strided_slice %123 {offsets = [0, 96], sizes = [2, 32], strides = [1, 1]} : vector<2x128xf32> to vector<2x32xf32>
    %128 = arith.mulf %125, %84 : vector<2x32xf32>
    %129 = arith.mulf %124, %126 : vector<2x32xf32>
    %130 = arith.addf %128, %129 : vector<2x32xf32>
    %131 = math.tanh %130 : vector<2x32xf32>
    %132 = arith.mulf %127, %131 : vector<2x32xf32>
    %133 = arith.truncf %132 : vector<2x32xf32> to vector<2x32xbf16>
    %c1_66 = arith.constant 1 : index
    %c0_67 = arith.constant 0 : index
    %c0_68 = arith.constant 0 : index
    %134 = vector.load %arg2[%c1_66, %c0_67, %c0_68] : memref<2x32x128xbf16, #tpu.memory_space<vmem>>, vector<1x32x128xbf16>
    %135 = vector.shape_cast %134 : vector<1x32x128xbf16> to vector<32x128xbf16>
    %cst_69 = arith.constant dense<0.000000e+00> : vector<2x128xf32>
    %136 = tpu.matmul %133, %135, %cst_69 {dimension_numbers = #tpu.dot_dimension_numbers<[1], [0], [0], [1], [0, 0, 1, 1], [], []>} : vector<2x32xbf16>, vector<32x128xbf16>, vector<2x128xf32> -> vector<2x128xf32>
    %c1_70 = arith.constant 1 : index
    %c0_71 = arith.constant 0 : index
    %c0_72 = arith.constant 0 : index
    %137 = vector.load %arg3[%c1_70, %c0_71, %c0_72] : memref<2x32x128xbf16, #tpu.memory_space<vmem>>, vector<1x32x128xbf16>
    %138 = vector.shape_cast %137 : vector<1x32x128xbf16> to vector<32x128xbf16>
    %cst_73 = arith.constant dense<0.000000e+00> : vector<2x128xf32>
    %139 = tpu.matmul %110, %138, %cst_73 {dimension_numbers = #tpu.dot_dimension_numbers<[1], [0], [0], [1], [0, 0, 1, 1], [], []>} : vector<2x32xbf16>, vector<32x128xbf16>, vector<2x128xf32> -> vector<2x128xf32>
    %140 = arith.addf %136, %139 : vector<2x128xf32>
    %141 = arith.addf %140, %7 : vector<2x128xf32>
    %142 = math.tanh %141 : vector<2x128xf32>
    %cst_74 = arith.constant 5.000000e-01 : f32
    %143 = vector.broadcast %cst_74 : f32 to vector<2x128xf32>
    %144 = arith.mulf %143, %142 : vector<2x128xf32>
    %cst_75 = arith.constant 5.000000e-01 : f32
    %145 = vector.broadcast %cst_75 : f32 to vector<2x128xf32>
    %146 = arith.addf %144, %145 : vector<2x128xf32>
    %147 = vector.extract_strided_slice %146 {offsets = [0, 0], sizes = [2, 32], strides = [1, 1]} : vector<2x128xf32> to vector<2x32xf32>
    %148 = vector.extract_strided_slice %146 {offsets = [0, 32], sizes = [2, 32], strides = [1, 1]} : vector<2x128xf32> to vector<2x32xf32>
    %149 = vector.extract_strided_slice %142 {offsets = [0, 64], sizes = [2, 32], strides = [1, 1]} : vector<2x128xf32> to vector<2x32xf32>
    %150 = vector.extract_strided_slice %146 {offsets = [0, 96], sizes = [2, 32], strides = [1, 1]} : vector<2x128xf32> to vector<2x32xf32>
    %151 = arith.mulf %148, %107 : vector<2x32xf32>
    %152 = arith.mulf %147, %149 : vector<2x32xf32>
    %153 = arith.addf %151, %152 : vector<2x32xf32>
    %154 = math.tanh %153 : vector<2x32xf32>
    %155 = arith.mulf %150, %154 : vector<2x32xf32>
    %156 = arith.truncf %155 : vector<2x32xf32> to vector<2x32xbf16>
    %c0_76 = arith.constant 0 : index
    %c0_77 = arith.constant 0 : index
    %c0_78 = arith.constant 0 : index
    %157 = vector.load %arg2[%c0_76, %c0_77, %c0_78] : memref<2x32x128xbf16, #tpu.memory_space<vmem>>, vector<1x32x128xbf16>
    %158 = vector.shape_cast %157 : vector<1x32x128xbf16> to vector<32x128xbf16>
    %cst_79 = arith.constant dense<0.000000e+00> : vector<2x128xf32>
    %159 = tpu.matmul %156, %158, %cst_79 {dimension_numbers = #tpu.dot_dimension_numbers<[1], [0], [0], [1], [0, 0, 1, 1], [], []>} : vector<2x32xbf16>, vector<32x128xbf16>, vector<2x128xf32> -> vector<2x128xf32>
    %c0_80 = arith.constant 0 : index
    %c0_81 = arith.constant 0 : index
    %c0_82 = arith.constant 0 : index
    %160 = vector.load %arg3[%c0_80, %c0_81, %c0_82] : memref<2x32x128xbf16, #tpu.memory_space<vmem>>, vector<1x32x128xbf16>
    %161 = vector.shape_cast %160 : vector<1x32x128xbf16> to vector<32x128xbf16>
    %cst_83 = arith.constant dense<0.000000e+00> : vector<2x128xf32>
    %162 = tpu.matmul %133, %161, %cst_83 {dimension_numbers = #tpu.dot_dimension_numbers<[1], [0], [0], [1], [0, 0, 1, 1], [], []>} : vector<2x32xbf16>, vector<32x128xbf16>, vector<2x128xf32> -> vector<2x128xf32>
    %163 = arith.addf %159, %162 : vector<2x128xf32>
    %164 = arith.addf %163, %3 : vector<2x128xf32>
    %165 = math.tanh %164 : vector<2x128xf32>
    %cst_84 = arith.constant 5.000000e-01 : f32
    %166 = vector.broadcast %cst_84 : f32 to vector<2x128xf32>
    %167 = arith.mulf %166, %165 : vector<2x128xf32>
    %cst_85 = arith.constant 5.000000e-01 : f32
    %168 = vector.broadcast %cst_85 : f32 to vector<2x128xf32>
    %169 = arith.addf %167, %168 : vector<2x128xf32>
    %170 = vector.extract_strided_slice %169 {offsets = [0, 0], sizes = [2, 32], strides = [1, 1]} : vector<2x128xf32> to vector<2x32xf32>
    %171 = vector.extract_strided_slice %169 {offsets = [0, 32], sizes = [2, 32], strides = [1, 1]} : vector<2x128xf32> to vector<2x32xf32>
    %172 = vector.extract_strided_slice %165 {offsets = [0, 64], sizes = [2, 32], strides = [1, 1]} : vector<2x128xf32> to vector<2x32xf32>
    %173 = vector.extract_strided_slice %169 {offsets = [0, 96], sizes = [2, 32], strides = [1, 1]} : vector<2x128xf32> to vector<2x32xf32>
    %174 = arith.mulf %171, %130 : vector<2x32xf32>
    %175 = arith.mulf %170, %172 : vector<2x32xf32>
    %176 = arith.addf %174, %175 : vector<2x32xf32>
    %177 = math.tanh %176 : vector<2x32xf32>
    %178 = arith.mulf %173, %177 : vector<2x32xf32>
    %179 = arith.truncf %178 : vector<2x32xf32> to vector<2x32xbf16>
    %c1_86 = arith.constant 1 : index
    %c0_87 = arith.constant 0 : index
    %c0_88 = arith.constant 0 : index
    %180 = vector.load %arg2[%c1_86, %c0_87, %c0_88] : memref<2x32x128xbf16, #tpu.memory_space<vmem>>, vector<1x32x128xbf16>
    %181 = vector.shape_cast %180 : vector<1x32x128xbf16> to vector<32x128xbf16>
    %cst_89 = arith.constant dense<0.000000e+00> : vector<2x128xf32>
    %182 = tpu.matmul %179, %181, %cst_89 {dimension_numbers = #tpu.dot_dimension_numbers<[1], [0], [0], [1], [0, 0, 1, 1], [], []>} : vector<2x32xbf16>, vector<32x128xbf16>, vector<2x128xf32> -> vector<2x128xf32>
    %c1_90 = arith.constant 1 : index
    %c0_91 = arith.constant 0 : index
    %c0_92 = arith.constant 0 : index
    %183 = vector.load %arg3[%c1_90, %c0_91, %c0_92] : memref<2x32x128xbf16, #tpu.memory_space<vmem>>, vector<1x32x128xbf16>
    %184 = vector.shape_cast %183 : vector<1x32x128xbf16> to vector<32x128xbf16>
    %cst_93 = arith.constant dense<0.000000e+00> : vector<2x128xf32>
    %185 = tpu.matmul %156, %184, %cst_93 {dimension_numbers = #tpu.dot_dimension_numbers<[1], [0], [0], [1], [0, 0, 1, 1], [], []>} : vector<2x32xbf16>, vector<32x128xbf16>, vector<2x128xf32> -> vector<2x128xf32>
    %186 = arith.addf %182, %185 : vector<2x128xf32>
    %187 = arith.addf %186, %7 : vector<2x128xf32>
    %188 = math.tanh %187 : vector<2x128xf32>
    %cst_94 = arith.constant 5.000000e-01 : f32
    %189 = vector.broadcast %cst_94 : f32 to vector<2x128xf32>
    %190 = arith.mulf %189, %188 : vector<2x128xf32>
    %cst_95 = arith.constant 5.000000e-01 : f32
    %191 = vector.broadcast %cst_95 : f32 to vector<2x128xf32>
    %192 = arith.addf %190, %191 : vector<2x128xf32>
    %193 = vector.extract_strided_slice %192 {offsets = [0, 0], sizes = [2, 32], strides = [1, 1]} : vector<2x128xf32> to vector<2x32xf32>
    %194 = vector.extract_strided_slice %192 {offsets = [0, 32], sizes = [2, 32], strides = [1, 1]} : vector<2x128xf32> to vector<2x32xf32>
    %195 = vector.extract_strided_slice %188 {offsets = [0, 64], sizes = [2, 32], strides = [1, 1]} : vector<2x128xf32> to vector<2x32xf32>
    %196 = vector.extract_strided_slice %192 {offsets = [0, 96], sizes = [2, 32], strides = [1, 1]} : vector<2x128xf32> to vector<2x32xf32>
    %197 = arith.mulf %194, %153 : vector<2x32xf32>
    %198 = arith.mulf %193, %195 : vector<2x32xf32>
    %199 = arith.addf %197, %198 : vector<2x32xf32>
    %200 = math.tanh %199 : vector<2x32xf32>
    %201 = arith.mulf %196, %200 : vector<2x32xf32>
    %202 = arith.truncf %201 : vector<2x32xf32> to vector<2x32xbf16>
    %c0_96 = arith.constant 0 : index
    %c0_97 = arith.constant 0 : index
    %c0_98 = arith.constant 0 : index
    %203 = vector.load %arg2[%c0_96, %c0_97, %c0_98] : memref<2x32x128xbf16, #tpu.memory_space<vmem>>, vector<1x32x128xbf16>
    %204 = vector.shape_cast %203 : vector<1x32x128xbf16> to vector<32x128xbf16>
    %cst_99 = arith.constant dense<0.000000e+00> : vector<2x128xf32>
    %205 = tpu.matmul %202, %204, %cst_99 {dimension_numbers = #tpu.dot_dimension_numbers<[1], [0], [0], [1], [0, 0, 1, 1], [], []>} : vector<2x32xbf16>, vector<32x128xbf16>, vector<2x128xf32> -> vector<2x128xf32>
    %c0_100 = arith.constant 0 : index
    %c0_101 = arith.constant 0 : index
    %c0_102 = arith.constant 0 : index
    %206 = vector.load %arg3[%c0_100, %c0_101, %c0_102] : memref<2x32x128xbf16, #tpu.memory_space<vmem>>, vector<1x32x128xbf16>
    %207 = vector.shape_cast %206 : vector<1x32x128xbf16> to vector<32x128xbf16>
    %cst_103 = arith.constant dense<0.000000e+00> : vector<2x128xf32>
    %208 = tpu.matmul %179, %207, %cst_103 {dimension_numbers = #tpu.dot_dimension_numbers<[1], [0], [0], [1], [0, 0, 1, 1], [], []>} : vector<2x32xbf16>, vector<32x128xbf16>, vector<2x128xf32> -> vector<2x128xf32>
    %209 = arith.addf %205, %208 : vector<2x128xf32>
    %210 = arith.addf %209, %3 : vector<2x128xf32>
    %211 = math.tanh %210 : vector<2x128xf32>
    %cst_104 = arith.constant 5.000000e-01 : f32
    %212 = vector.broadcast %cst_104 : f32 to vector<2x128xf32>
    %213 = arith.mulf %212, %211 : vector<2x128xf32>
    %cst_105 = arith.constant 5.000000e-01 : f32
    %214 = vector.broadcast %cst_105 : f32 to vector<2x128xf32>
    %215 = arith.addf %213, %214 : vector<2x128xf32>
    %216 = vector.extract_strided_slice %215 {offsets = [0, 0], sizes = [2, 32], strides = [1, 1]} : vector<2x128xf32> to vector<2x32xf32>
    %217 = vector.extract_strided_slice %215 {offsets = [0, 32], sizes = [2, 32], strides = [1, 1]} : vector<2x128xf32> to vector<2x32xf32>
    %218 = vector.extract_strided_slice %211 {offsets = [0, 64], sizes = [2, 32], strides = [1, 1]} : vector<2x128xf32> to vector<2x32xf32>
    %219 = vector.extract_strided_slice %215 {offsets = [0, 96], sizes = [2, 32], strides = [1, 1]} : vector<2x128xf32> to vector<2x32xf32>
    %220 = arith.mulf %217, %176 : vector<2x32xf32>
    %221 = arith.mulf %216, %218 : vector<2x32xf32>
    %222 = arith.addf %220, %221 : vector<2x32xf32>
    %223 = math.tanh %222 : vector<2x32xf32>
    %224 = arith.mulf %219, %223 : vector<2x32xf32>
    %225 = arith.truncf %224 : vector<2x32xf32> to vector<2x32xbf16>
    %c1_106 = arith.constant 1 : index
    %c0_107 = arith.constant 0 : index
    %c0_108 = arith.constant 0 : index
    %226 = vector.load %arg2[%c1_106, %c0_107, %c0_108] : memref<2x32x128xbf16, #tpu.memory_space<vmem>>, vector<1x32x128xbf16>
    %227 = vector.shape_cast %226 : vector<1x32x128xbf16> to vector<32x128xbf16>
    %cst_109 = arith.constant dense<0.000000e+00> : vector<2x128xf32>
    %228 = tpu.matmul %225, %227, %cst_109 {dimension_numbers = #tpu.dot_dimension_numbers<[1], [0], [0], [1], [0, 0, 1, 1], [], []>} : vector<2x32xbf16>, vector<32x128xbf16>, vector<2x128xf32> -> vector<2x128xf32>
    %c1_110 = arith.constant 1 : index
    %c0_111 = arith.constant 0 : index
    %c0_112 = arith.constant 0 : index
    %229 = vector.load %arg3[%c1_110, %c0_111, %c0_112] : memref<2x32x128xbf16, #tpu.memory_space<vmem>>, vector<1x32x128xbf16>
    %230 = vector.shape_cast %229 : vector<1x32x128xbf16> to vector<32x128xbf16>
    %cst_113 = arith.constant dense<0.000000e+00> : vector<2x128xf32>
    %231 = tpu.matmul %202, %230, %cst_113 {dimension_numbers = #tpu.dot_dimension_numbers<[1], [0], [0], [1], [0, 0, 1, 1], [], []>} : vector<2x32xbf16>, vector<32x128xbf16>, vector<2x128xf32> -> vector<2x128xf32>
    %232 = arith.addf %228, %231 : vector<2x128xf32>
    %233 = arith.addf %232, %7 : vector<2x128xf32>
    %234 = math.tanh %233 : vector<2x128xf32>
    %cst_114 = arith.constant 5.000000e-01 : f32
    %235 = vector.broadcast %cst_114 : f32 to vector<2x128xf32>
    %236 = arith.mulf %235, %234 : vector<2x128xf32>
    %cst_115 = arith.constant 5.000000e-01 : f32
    %237 = vector.broadcast %cst_115 : f32 to vector<2x128xf32>
    %238 = arith.addf %236, %237 : vector<2x128xf32>
    %239 = vector.extract_strided_slice %238 {offsets = [0, 0], sizes = [2, 32], strides = [1, 1]} : vector<2x128xf32> to vector<2x32xf32>
    %240 = vector.extract_strided_slice %238 {offsets = [0, 32], sizes = [2, 32], strides = [1, 1]} : vector<2x128xf32> to vector<2x32xf32>
    %241 = vector.extract_strided_slice %234 {offsets = [0, 64], sizes = [2, 32], strides = [1, 1]} : vector<2x128xf32> to vector<2x32xf32>
    %242 = vector.extract_strided_slice %238 {offsets = [0, 96], sizes = [2, 32], strides = [1, 1]} : vector<2x128xf32> to vector<2x32xf32>
    %243 = arith.mulf %240, %199 : vector<2x32xf32>
    %244 = arith.mulf %239, %241 : vector<2x32xf32>
    %245 = arith.addf %243, %244 : vector<2x32xf32>
    %246 = math.tanh %245 : vector<2x32xf32>
    %247 = arith.mulf %242, %246 : vector<2x32xf32>
    %248 = arith.truncf %247 : vector<2x32xf32> to vector<2x32xbf16>
    %c0_116 = arith.constant 0 : index
    %c0_117 = arith.constant 0 : index
    %c0_118 = arith.constant 0 : index
    %249 = vector.load %arg2[%c0_116, %c0_117, %c0_118] : memref<2x32x128xbf16, #tpu.memory_space<vmem>>, vector<1x32x128xbf16>
    %250 = vector.shape_cast %249 : vector<1x32x128xbf16> to vector<32x128xbf16>
    %cst_119 = arith.constant dense<0.000000e+00> : vector<2x128xf32>
    %251 = tpu.matmul %248, %250, %cst_119 {dimension_numbers = #tpu.dot_dimension_numbers<[1], [0], [0], [1], [0, 0, 1, 1], [], []>} : vector<2x32xbf16>, vector<32x128xbf16>, vector<2x128xf32> -> vector<2x128xf32>
    %c0_120 = arith.constant 0 : index
    %c0_121 = arith.constant 0 : index
    %c0_122 = arith.constant 0 : index
    %252 = vector.load %arg3[%c0_120, %c0_121, %c0_122] : memref<2x32x128xbf16, #tpu.memory_space<vmem>>, vector<1x32x128xbf16>
    %253 = vector.shape_cast %252 : vector<1x32x128xbf16> to vector<32x128xbf16>
    %cst_123 = arith.constant dense<0.000000e+00> : vector<2x128xf32>
    %254 = tpu.matmul %225, %253, %cst_123 {dimension_numbers = #tpu.dot_dimension_numbers<[1], [0], [0], [1], [0, 0, 1, 1], [], []>} : vector<2x32xbf16>, vector<32x128xbf16>, vector<2x128xf32> -> vector<2x128xf32>
    %255 = arith.addf %251, %254 : vector<2x128xf32>
    %256 = arith.addf %255, %3 : vector<2x128xf32>
    %257 = math.tanh %256 : vector<2x128xf32>
    %cst_124 = arith.constant 5.000000e-01 : f32
    %258 = vector.broadcast %cst_124 : f32 to vector<2x128xf32>
    %259 = arith.mulf %258, %257 : vector<2x128xf32>
    %cst_125 = arith.constant 5.000000e-01 : f32
    %260 = vector.broadcast %cst_125 : f32 to vector<2x128xf32>
    %261 = arith.addf %259, %260 : vector<2x128xf32>
    %262 = vector.extract_strided_slice %261 {offsets = [0, 0], sizes = [2, 32], strides = [1, 1]} : vector<2x128xf32> to vector<2x32xf32>
    %263 = vector.extract_strided_slice %261 {offsets = [0, 32], sizes = [2, 32], strides = [1, 1]} : vector<2x128xf32> to vector<2x32xf32>
    %264 = vector.extract_strided_slice %257 {offsets = [0, 64], sizes = [2, 32], strides = [1, 1]} : vector<2x128xf32> to vector<2x32xf32>
    %265 = vector.extract_strided_slice %261 {offsets = [0, 96], sizes = [2, 32], strides = [1, 1]} : vector<2x128xf32> to vector<2x32xf32>
    %266 = arith.mulf %263, %222 : vector<2x32xf32>
    %267 = arith.mulf %262, %264 : vector<2x32xf32>
    %268 = arith.addf %266, %267 : vector<2x32xf32>
    %269 = math.tanh %268 : vector<2x32xf32>
    %270 = arith.mulf %265, %269 : vector<2x32xf32>
    %271 = arith.truncf %270 : vector<2x32xf32> to vector<2x32xbf16>
    %c1_126 = arith.constant 1 : index
    %c0_127 = arith.constant 0 : index
    %c0_128 = arith.constant 0 : index
    %272 = vector.load %arg2[%c1_126, %c0_127, %c0_128] : memref<2x32x128xbf16, #tpu.memory_space<vmem>>, vector<1x32x128xbf16>
    %273 = vector.shape_cast %272 : vector<1x32x128xbf16> to vector<32x128xbf16>
    %cst_129 = arith.constant dense<0.000000e+00> : vector<2x128xf32>
    %274 = tpu.matmul %271, %273, %cst_129 {dimension_numbers = #tpu.dot_dimension_numbers<[1], [0], [0], [1], [0, 0, 1, 1], [], []>} : vector<2x32xbf16>, vector<32x128xbf16>, vector<2x128xf32> -> vector<2x128xf32>
    %c1_130 = arith.constant 1 : index
    %c0_131 = arith.constant 0 : index
    %c0_132 = arith.constant 0 : index
    %275 = vector.load %arg3[%c1_130, %c0_131, %c0_132] : memref<2x32x128xbf16, #tpu.memory_space<vmem>>, vector<1x32x128xbf16>
    %276 = vector.shape_cast %275 : vector<1x32x128xbf16> to vector<32x128xbf16>
    %cst_133 = arith.constant dense<0.000000e+00> : vector<2x128xf32>
    %277 = tpu.matmul %248, %276, %cst_133 {dimension_numbers = #tpu.dot_dimension_numbers<[1], [0], [0], [1], [0, 0, 1, 1], [], []>} : vector<2x32xbf16>, vector<32x128xbf16>, vector<2x128xf32> -> vector<2x128xf32>
    %278 = arith.addf %274, %277 : vector<2x128xf32>
    %279 = arith.addf %278, %7 : vector<2x128xf32>
    %280 = math.tanh %279 : vector<2x128xf32>
    %cst_134 = arith.constant 5.000000e-01 : f32
    %281 = vector.broadcast %cst_134 : f32 to vector<2x128xf32>
    %282 = arith.mulf %281, %280 : vector<2x128xf32>
    %cst_135 = arith.constant 5.000000e-01 : f32
    %283 = vector.broadcast %cst_135 : f32 to vector<2x128xf32>
    %284 = arith.addf %282, %283 : vector<2x128xf32>
    %285 = vector.extract_strided_slice %284 {offsets = [0, 0], sizes = [2, 32], strides = [1, 1]} : vector<2x128xf32> to vector<2x32xf32>
    %286 = vector.extract_strided_slice %284 {offsets = [0, 32], sizes = [2, 32], strides = [1, 1]} : vector<2x128xf32> to vector<2x32xf32>
    %287 = vector.extract_strided_slice %280 {offsets = [0, 64], sizes = [2, 32], strides = [1, 1]} : vector<2x128xf32> to vector<2x32xf32>
    %288 = vector.extract_strided_slice %284 {offsets = [0, 96], sizes = [2, 32], strides = [1, 1]} : vector<2x128xf32> to vector<2x32xf32>
    %289 = arith.mulf %286, %245 : vector<2x32xf32>
    %290 = arith.mulf %285, %287 : vector<2x32xf32>
    %291 = arith.addf %289, %290 : vector<2x32xf32>
    %292 = math.tanh %291 : vector<2x32xf32>
    %293 = arith.mulf %288, %292 : vector<2x32xf32>
    %294 = arith.truncf %293 : vector<2x32xf32> to vector<2x32xbf16>
    %c0_136 = arith.constant 0 : index
    %c0_137 = arith.constant 0 : index
    %c0_138 = arith.constant 0 : index
    %295 = vector.load %arg2[%c0_136, %c0_137, %c0_138] : memref<2x32x128xbf16, #tpu.memory_space<vmem>>, vector<1x32x128xbf16>
    %296 = vector.shape_cast %295 : vector<1x32x128xbf16> to vector<32x128xbf16>
    %cst_139 = arith.constant dense<0.000000e+00> : vector<2x128xf32>
    %297 = tpu.matmul %294, %296, %cst_139 {dimension_numbers = #tpu.dot_dimension_numbers<[1], [0], [0], [1], [0, 0, 1, 1], [], []>} : vector<2x32xbf16>, vector<32x128xbf16>, vector<2x128xf32> -> vector<2x128xf32>
    %c0_140 = arith.constant 0 : index
    %c0_141 = arith.constant 0 : index
    %c0_142 = arith.constant 0 : index
    %298 = vector.load %arg3[%c0_140, %c0_141, %c0_142] : memref<2x32x128xbf16, #tpu.memory_space<vmem>>, vector<1x32x128xbf16>
    %299 = vector.shape_cast %298 : vector<1x32x128xbf16> to vector<32x128xbf16>
    %cst_143 = arith.constant dense<0.000000e+00> : vector<2x128xf32>
    %300 = tpu.matmul %271, %299, %cst_143 {dimension_numbers = #tpu.dot_dimension_numbers<[1], [0], [0], [1], [0, 0, 1, 1], [], []>} : vector<2x32xbf16>, vector<32x128xbf16>, vector<2x128xf32> -> vector<2x128xf32>
    %301 = arith.addf %297, %300 : vector<2x128xf32>
    %302 = arith.addf %301, %3 : vector<2x128xf32>
    %303 = math.tanh %302 : vector<2x128xf32>
    %cst_144 = arith.constant 5.000000e-01 : f32
    %304 = vector.broadcast %cst_144 : f32 to vector<2x128xf32>
    %305 = arith.mulf %304, %303 : vector<2x128xf32>
    %cst_145 = arith.constant 5.000000e-01 : f32
    %306 = vector.broadcast %cst_145 : f32 to vector<2x128xf32>
    %307 = arith.addf %305, %306 : vector<2x128xf32>
    %308 = vector.extract_strided_slice %307 {offsets = [0, 0], sizes = [2, 32], strides = [1, 1]} : vector<2x128xf32> to vector<2x32xf32>
    %309 = vector.extract_strided_slice %307 {offsets = [0, 32], sizes = [2, 32], strides = [1, 1]} : vector<2x128xf32> to vector<2x32xf32>
    %310 = vector.extract_strided_slice %303 {offsets = [0, 64], sizes = [2, 32], strides = [1, 1]} : vector<2x128xf32> to vector<2x32xf32>
    %311 = vector.extract_strided_slice %307 {offsets = [0, 96], sizes = [2, 32], strides = [1, 1]} : vector<2x128xf32> to vector<2x32xf32>
    %312 = arith.mulf %309, %268 : vector<2x32xf32>
    %313 = arith.mulf %308, %310 : vector<2x32xf32>
    %314 = arith.addf %312, %313 : vector<2x32xf32>
    %315 = math.tanh %314 : vector<2x32xf32>
    %316 = arith.mulf %311, %315 : vector<2x32xf32>
    %317 = arith.truncf %316 : vector<2x32xf32> to vector<2x32xbf16>
    %c1_146 = arith.constant 1 : index
    %c0_147 = arith.constant 0 : index
    %c0_148 = arith.constant 0 : index
    %318 = vector.load %arg2[%c1_146, %c0_147, %c0_148] : memref<2x32x128xbf16, #tpu.memory_space<vmem>>, vector<1x32x128xbf16>
    %319 = vector.shape_cast %318 : vector<1x32x128xbf16> to vector<32x128xbf16>
    %cst_149 = arith.constant dense<0.000000e+00> : vector<2x128xf32>
    %320 = tpu.matmul %317, %319, %cst_149 {dimension_numbers = #tpu.dot_dimension_numbers<[1], [0], [0], [1], [0, 0, 1, 1], [], []>} : vector<2x32xbf16>, vector<32x128xbf16>, vector<2x128xf32> -> vector<2x128xf32>
    %c1_150 = arith.constant 1 : index
    %c0_151 = arith.constant 0 : index
    %c0_152 = arith.constant 0 : index
    %321 = vector.load %arg3[%c1_150, %c0_151, %c0_152] : memref<2x32x128xbf16, #tpu.memory_space<vmem>>, vector<1x32x128xbf16>
    %322 = vector.shape_cast %321 : vector<1x32x128xbf16> to vector<32x128xbf16>
    %cst_153 = arith.constant dense<0.000000e+00> : vector<2x128xf32>
    %323 = tpu.matmul %294, %322, %cst_153 {dimension_numbers = #tpu.dot_dimension_numbers<[1], [0], [0], [1], [0, 0, 1, 1], [], []>} : vector<2x32xbf16>, vector<32x128xbf16>, vector<2x128xf32> -> vector<2x128xf32>
    %324 = arith.addf %320, %323 : vector<2x128xf32>
    %325 = arith.addf %324, %7 : vector<2x128xf32>
    %326 = math.tanh %325 : vector<2x128xf32>
    %cst_154 = arith.constant 5.000000e-01 : f32
    %327 = vector.broadcast %cst_154 : f32 to vector<2x128xf32>
    %328 = arith.mulf %327, %326 : vector<2x128xf32>
    %cst_155 = arith.constant 5.000000e-01 : f32
    %329 = vector.broadcast %cst_155 : f32 to vector<2x128xf32>
    %330 = arith.addf %328, %329 : vector<2x128xf32>
    %331 = vector.extract_strided_slice %330 {offsets = [0, 0], sizes = [2, 32], strides = [1, 1]} : vector<2x128xf32> to vector<2x32xf32>
    %332 = vector.extract_strided_slice %330 {offsets = [0, 32], sizes = [2, 32], strides = [1, 1]} : vector<2x128xf32> to vector<2x32xf32>
    %333 = vector.extract_strided_slice %326 {offsets = [0, 64], sizes = [2, 32], strides = [1, 1]} : vector<2x128xf32> to vector<2x32xf32>
    %334 = vector.extract_strided_slice %330 {offsets = [0, 96], sizes = [2, 32], strides = [1, 1]} : vector<2x128xf32> to vector<2x32xf32>
    %335 = arith.mulf %332, %291 : vector<2x32xf32>
    %336 = arith.mulf %331, %333 : vector<2x32xf32>
    %337 = arith.addf %335, %336 : vector<2x32xf32>
    %338 = math.tanh %337 : vector<2x32xf32>
    %339 = arith.mulf %334, %338 : vector<2x32xf32>
    %340 = arith.truncf %339 : vector<2x32xf32> to vector<2x32xbf16>
    %c0_156 = arith.constant 0 : index
    %c0_157 = arith.constant 0 : index
    %c0_158 = arith.constant 0 : index
    %341 = vector.load %arg2[%c0_156, %c0_157, %c0_158] : memref<2x32x128xbf16, #tpu.memory_space<vmem>>, vector<1x32x128xbf16>
    %342 = vector.shape_cast %341 : vector<1x32x128xbf16> to vector<32x128xbf16>
    %cst_159 = arith.constant dense<0.000000e+00> : vector<2x128xf32>
    %343 = tpu.matmul %340, %342, %cst_159 {dimension_numbers = #tpu.dot_dimension_numbers<[1], [0], [0], [1], [0, 0, 1, 1], [], []>} : vector<2x32xbf16>, vector<32x128xbf16>, vector<2x128xf32> -> vector<2x128xf32>
    %c0_160 = arith.constant 0 : index
    %c0_161 = arith.constant 0 : index
    %c0_162 = arith.constant 0 : index
    %344 = vector.load %arg3[%c0_160, %c0_161, %c0_162] : memref<2x32x128xbf16, #tpu.memory_space<vmem>>, vector<1x32x128xbf16>
    %345 = vector.shape_cast %344 : vector<1x32x128xbf16> to vector<32x128xbf16>
    %cst_163 = arith.constant dense<0.000000e+00> : vector<2x128xf32>
    %346 = tpu.matmul %317, %345, %cst_163 {dimension_numbers = #tpu.dot_dimension_numbers<[1], [0], [0], [1], [0, 0, 1, 1], [], []>} : vector<2x32xbf16>, vector<32x128xbf16>, vector<2x128xf32> -> vector<2x128xf32>
    %347 = arith.addf %343, %346 : vector<2x128xf32>
    %348 = arith.addf %347, %3 : vector<2x128xf32>
    %349 = math.tanh %348 : vector<2x128xf32>
    %cst_164 = arith.constant 5.000000e-01 : f32
    %350 = vector.broadcast %cst_164 : f32 to vector<2x128xf32>
    %351 = arith.mulf %350, %349 : vector<2x128xf32>
    %cst_165 = arith.constant 5.000000e-01 : f32
    %352 = vector.broadcast %cst_165 : f32 to vector<2x128xf32>
    %353 = arith.addf %351, %352 : vector<2x128xf32>
    %354 = vector.extract_strided_slice %353 {offsets = [0, 0], sizes = [2, 32], strides = [1, 1]} : vector<2x128xf32> to vector<2x32xf32>
    %355 = vector.extract_strided_slice %353 {offsets = [0, 32], sizes = [2, 32], strides = [1, 1]} : vector<2x128xf32> to vector<2x32xf32>
    %356 = vector.extract_strided_slice %349 {offsets = [0, 64], sizes = [2, 32], strides = [1, 1]} : vector<2x128xf32> to vector<2x32xf32>
    %357 = vector.extract_strided_slice %353 {offsets = [0, 96], sizes = [2, 32], strides = [1, 1]} : vector<2x128xf32> to vector<2x32xf32>
    %358 = arith.mulf %355, %314 : vector<2x32xf32>
    %359 = arith.mulf %354, %356 : vector<2x32xf32>
    %360 = arith.addf %358, %359 : vector<2x32xf32>
    %361 = math.tanh %360 : vector<2x32xf32>
    %362 = arith.mulf %357, %361 : vector<2x32xf32>
    %363 = arith.truncf %362 : vector<2x32xf32> to vector<2x32xbf16>
    %c1_166 = arith.constant 1 : index
    %c0_167 = arith.constant 0 : index
    %c0_168 = arith.constant 0 : index
    %364 = vector.load %arg2[%c1_166, %c0_167, %c0_168] : memref<2x32x128xbf16, #tpu.memory_space<vmem>>, vector<1x32x128xbf16>
    %365 = vector.shape_cast %364 : vector<1x32x128xbf16> to vector<32x128xbf16>
    %cst_169 = arith.constant dense<0.000000e+00> : vector<2x128xf32>
    %366 = tpu.matmul %363, %365, %cst_169 {dimension_numbers = #tpu.dot_dimension_numbers<[1], [0], [0], [1], [0, 0, 1, 1], [], []>} : vector<2x32xbf16>, vector<32x128xbf16>, vector<2x128xf32> -> vector<2x128xf32>
    %c1_170 = arith.constant 1 : index
    %c0_171 = arith.constant 0 : index
    %c0_172 = arith.constant 0 : index
    %367 = vector.load %arg3[%c1_170, %c0_171, %c0_172] : memref<2x32x128xbf16, #tpu.memory_space<vmem>>, vector<1x32x128xbf16>
    %368 = vector.shape_cast %367 : vector<1x32x128xbf16> to vector<32x128xbf16>
    %cst_173 = arith.constant dense<0.000000e+00> : vector<2x128xf32>
    %369 = tpu.matmul %340, %368, %cst_173 {dimension_numbers = #tpu.dot_dimension_numbers<[1], [0], [0], [1], [0, 0, 1, 1], [], []>} : vector<2x32xbf16>, vector<32x128xbf16>, vector<2x128xf32> -> vector<2x128xf32>
    %370 = arith.addf %366, %369 : vector<2x128xf32>
    %371 = arith.addf %370, %7 : vector<2x128xf32>
    %372 = math.tanh %371 : vector<2x128xf32>
    %cst_174 = arith.constant 5.000000e-01 : f32
    %373 = vector.broadcast %cst_174 : f32 to vector<2x128xf32>
    %374 = arith.mulf %373, %372 : vector<2x128xf32>
    %cst_175 = arith.constant 5.000000e-01 : f32
    %375 = vector.broadcast %cst_175 : f32 to vector<2x128xf32>
    %376 = arith.addf %374, %375 : vector<2x128xf32>
    %377 = vector.extract_strided_slice %376 {offsets = [0, 0], sizes = [2, 32], strides = [1, 1]} : vector<2x128xf32> to vector<2x32xf32>
    %378 = vector.extract_strided_slice %376 {offsets = [0, 32], sizes = [2, 32], strides = [1, 1]} : vector<2x128xf32> to vector<2x32xf32>
    %379 = vector.extract_strided_slice %372 {offsets = [0, 64], sizes = [2, 32], strides = [1, 1]} : vector<2x128xf32> to vector<2x32xf32>
    %380 = vector.extract_strided_slice %376 {offsets = [0, 96], sizes = [2, 32], strides = [1, 1]} : vector<2x128xf32> to vector<2x32xf32>
    %381 = arith.mulf %378, %337 : vector<2x32xf32>
    %382 = arith.mulf %377, %379 : vector<2x32xf32>
    %383 = arith.addf %381, %382 : vector<2x32xf32>
    %384 = math.tanh %383 : vector<2x32xf32>
    %385 = arith.mulf %380, %384 : vector<2x32xf32>
    %386 = tpu.concatenate %385, %339, %293, %247, %201, %155, %109, %63 in 0 : vector<2x32xf32>, vector<2x32xf32>, vector<2x32xf32>, vector<2x32xf32>, vector<2x32xf32>, vector<2x32xf32>, vector<2x32xf32>, vector<2x32xf32> -> vector<16x32xf32>
    %387 = arith.truncf %386 : vector<16x32xf32> to vector<16x32xbf16>
    %c0_176 = arith.constant 0 : index
    %c0_177 = arith.constant 0 : index
    %388 = vector.load %arg5[%c0_176, %c0_177] : memref<32x64xbf16, #tpu.memory_space<vmem>>, vector<32x64xbf16>
    %cst_178 = arith.constant dense<0.000000e+00> : vector<16x64xf32>
    %389 = tpu.matmul %387, %388, %cst_178 {dimension_numbers = #tpu.dot_dimension_numbers<[1], [0], [0], [1], [0, 0, 1, 1], [], []>} : vector<16x32xbf16>, vector<32x64xbf16>, vector<16x64xf32> -> vector<16x64xf32>
    %c0_179 = arith.constant 0 : index
    %c0_180 = arith.constant 0 : index
    %390 = vector.load %arg6[%c0_179, %c0_180] : memref<1x64xf32, #tpu.memory_space<vmem>>, vector<1x64xf32>
    %391 = vector.broadcast %390 : vector<1x64xf32> to vector<16x64xf32>
    %392 = arith.addf %389, %391 : vector<16x64xf32>
    %c0_181 = arith.constant 0 : index
    %c0_182 = arith.constant 0 : index
    %393 = vector.load %arg7[%c0_181, %c0_182] : memref<16x64xf32, #tpu.memory_space<vmem>>, vector<16x64xf32>
    tpu.vector_store %arg7[%c0_181, %c0_182], %392 {strides = array<i32>} : memref<16x64xf32, #tpu.memory_space<vmem>>, vector<16x64xf32>,
    return
  }
}

</mosaic_0001>

<bundles_post_ra>
// kernel: dlstm_forward.1
= control target key start
LH: loop header
LB: loop body
LE: loop exit
PB: predicated region body
PF: predicated region fallthrough
CT: control target
= control target key end

     0   :  { %s1611_s0 = inlined_call_operand.vmem [shape: f32[2,2,32], index: 0, kind: input, shape index: {}]   ;;  %s1612_s1 = inlined_call_operand.vmem [shape: f32[2,2,32], index: 1, kind: input, shape index: {}]   ;;  %s1613_s2 = inlined_call_operand.vmem [shape: bf16[2,32,128], index: 2, kind: input, shape index: {}]   ;;  %s1614_s3 = inlined_call_operand.vmem [shape: bf16[2,32,128], index: 3, kind: input, shape index: {}]   ;;  %s1615_s4 = inlined_call_operand.vmem [shape: f32[2,1,128], index: 4, kind: input, shape index: {}]   ;;  %s1616_s5 = inlined_call_operand.vmem [shape: bf16[32,64], index: 5, kind: input, shape index: {}]   ;;  %s1617_s6 = inlined_call_operand.vmem [shape: f32[1,64], index: 6, kind: input, shape index: {}]   ;;  %s1618_s7 = inlined_call_operand.hbm [shape: f32[16,64], index: 7, kind: output, shape index: {}]  }
   0x1   :  { %v1316_v0 = vld [vmem:[%s1614_s3 + $0x8] sm:$0xff]  ;;  %v1326_v2 = vld [vmem:[%s1614_s3] sm:$0xff] }
   0x2   :  { %v1321_v1 = vld [vmem:[%s1613_s2 + $0x8] sm:$0xff]  ;;  %v1331_v3 = vld [vmem:[%s1613_s2] sm:$0xff]  ;;  %75 = vmatpush.bf16.msra.mxu0 %v1316_v0 }
   0x3   :  { %v37_v4 = vld [vmem:[%s1611_s0] sm:$0x3]  ;;  %103 = vmatpush.bf16.msra.mxu1 %v1321_v1 }
   0x4   :  { %12 = vsyncpa [#allocation3], 0  ;;  %v38_v5 = vpack.c.bf16 %v37_v4, %v37_v4  ;;  %vm65_vm0 = vcmask 261120   ;;  %v1267_v6 = vmov 0   ;;  %v1352_v7 = vld [vmem:[%s1615_s4] ss:$0 sm:$0xff] }
   0x5   :  { %s1268_s13 = smov 64   ;;  %v42_v15 = vld [vmem:[%s1612_s1] sm:$0x3]  ;;  %s1269_s16 = smov 32   ;;  %v1368_v25 = vld [vmem:[%s1614_s3 + $0x18] sm:$0xff]  ;;  %v1379_v27 = vld [vmem:[%s1614_s3 + $0x10] sm:$0xff] }
   0x6   :  { %76 = vmatpush.bf16.msra.mxu0 %v1326_v2  ;;  %v1373_v26 = vld [vmem:[%s1613_s2 + $0x18] sm:$0xff]  ;;  %167 = vmatpush.bf16.msra.mxu2 %v1368_v25  ;;  %v1076_v28 = vld [vmem:[%s1611_s0 + $0x2] sm:$0x3]  ;;  %v1388_v29 = vld [vmem:[%s1613_s2 + $0x10] sm:$0xff]  ;;  %vm1004_vm1 = vcmask 1041408   ;;  %vm1006_vm2 = vcmask 1043456  }
   0x7   :  { %104 = vmatpush.bf16.msra.mxu1 %v1331_v3  ;;  %198 = vmatpush.bf16.msra.mxu3 %v1373_v26  ;;  %v41_v30 = vpack.c.bf16 %v1076_v28, %v1076_v28  ;;  %v1077_v34 = vld [vmem:[%s1612_s1 + $0x2] sm:$0x3]  ;;  %v1413_v39 = vld [vmem:[%s1615_s4 + $0x1] ss:$0 sm:$0xff]  ;;  %vm1008_vm3 = vcmask 1045504   ;;  %vm1054_vm4 = vcmask 523264  }
   0x8   :  { %s1270_s8 = smov [#allocation2]   ;;  %s1063_s12 = sshll.u32 %s1618_s7, 4  ;;  %s1064_s12 = int_to_ptr.hbm [resolvable:$true] %s1063_s12 }
   0x9   :  { %1086 = vmatmul.msk.bf16.vlgmr.msra.gmra.mxu0 %vm65_vm0, %v38_v5  ;;  %s1061_s9 = sshll.u32 %s1270_s8, 4  ;;  %s1272_s14 = smov 8   ;;  %s1062_s9 = int_to_ptr.vmem [resolvable:$true] %s1061_s9 }
   0xa   :  { %237 = vmatpush.bf16.msrb.mxu0 %v1316_v0  ;;  %105 = vmatmul.bf16.vlgmr.msra.gmra.mxu1 %v1267_v6 }
   0xb   :  { %256 = vmatpush.bf16.msrb.mxu1 %v1321_v1  ;;  %168 = vmatpush.bf16.msra.mxu2 %v1379_v27 }
   0xc   :  { %199 = vmatpush.bf16.msra.mxu3 %v1388_v29 }
   0xe   :  { %238 = vmatpush.bf16.msrb.mxu0 %v1326_v2  ;;  %1111 = vmatmul.msk.bf16.vlgmr.msra.gmra.mxu2 %vm65_vm0, %v41_v30 }
   0xf   :  { %257 = vmatpush.bf16.msrb.mxu1 %v1331_v3  ;;  %291 = vmatpush.bf16.msrb.mxu2 %v1368_v25 }
  0x10   :  { %310 = vmatpush.bf16.msrb.mxu3 %v1373_v26 }
  0x12   :  { %345 = vmatpush.bf16.msra.mxu0 %v1316_v0 }
  0x13   :  { %364 = vmatpush.bf16.msra.mxu1 %v1321_v1  ;;  %292 = vmatpush.bf16.msrb.mxu2 %v1379_v27 }
  0x14   :  { %311 = vmatpush.bf16.msrb.mxu3 %v1388_v29 }
  0x16   :  { %346 = vmatpush.bf16.msra.mxu0 %v1326_v2 }
  0x17   :  { %365 = vmatpush.bf16.msra.mxu1 %v1331_v3  ;;  %399 = vmatpush.bf16.msra.mxu2 %v1368_v25 }
  0x1b   :  { %400 = vmatpush.bf16.msra.mxu2 %v1379_v27 }
  0x86   :  { %v78_v8 = vpop.f32.mrf.mxu0 }
  0x87   :  { %v106_v9 = vpop.f32.mrf.mxu1 }
  0x88   :  { %v107_v10 = vadd.f32 %v106_v9, %v78_v8 }
  0x8a   :  { %v110_v11 = vadd.f32 %v1352_v7, %v107_v10 }
  0x8c   :  { %1177 = vtanh.f32 %v110_v11 }
  0x8e   :  { %v80_v12 = vpop.f32.mrf.mxu0 }
  0x8f   :  { %v108_v13 = vpop.f32.mrf.mxu1 }
  0x91   :  { %v170_v36 = vpop.f32.mrf.mxu2 }
  0x92   :  { %v1178_v14 = vpop.eup %1177 }
  0x93   :  { %120 = vrot.lane.b32.xlu0 %v1178_v14, %s1268_s13  ;;  %v112_v16 = vmul.f32 0.5, %v1178_v14 }
  0x95   :  { %v113_v17 = vadd.f32 0.5, %v112_v16 }
  0x99   :  { %v172_v37 = vpop.f32.mrf.mxu2 }
  0x9b   :  { %115 = vrot.lane.b32.xlu0 %v42_v15, %s1269_s16 }
  0xa3   :  { %210 = vrot.lane.b32.xlu0 %v1077_v34, %s1269_s16 }
 0x105   :  { %v121_v18 = vpop.permute.xlu0 %120 }
 0x106   :  { %v123_v19 = vmul.f32 %v121_v18, %v113_v17 }
 0x108   :  { %125 = vrot.lane.b32.xlu1 %v123_v19, %s1269_s16 }
 0x10d   :  { %v116_v20 = vpop.permute.xlu0 %115 }
 0x10e   :  { %v118_v21 = vmul.f32 %v116_v20, %v113_v17 }
 0x115   :  { %v211_v50 = vpop.permute.xlu0 %210 }
 0x17a   :  { %v126_v22 = vpop.permute.xlu1 %125 }
 0x17b   :  { %v1361_v23 = vadd.f32 %v126_v22, %v118_v21 }
 0x17d   :  { %1179 = vtanh.f32 %v1361_v23 }
 0x183   :  { %v1180_v24 = vpop.eup %1179 }
 0x184   :  { %131 = vrot.lane.b32.xlu1 %v1180_v24, %s1268_s13 }
 0x1f6   :  { %v132_v31 = vpop.permute.xlu1 %131 }
 0x1f7   :  { %v134_v32 = vmul.f32 %v132_v31, %v113_v17 }
 0x1f9   :  { %v135_v33 = vpack.c.bf16 %v134_v32, %v134_v32 }
 0x1fb   :  { %175 = vrot.lane.b32.xlu2 %v135_v33, %s1269_s16 }
 0x255   :  { %v176_v35 = vpop.permute.xlu2 %175 }
 0x256   :  { %1120 = vmatmul.msk.bf16.vlgmr.msra.gmra.mxu3 %vm65_vm0, %v176_v35  ;;  %1121 = vmatmul.msk.bf16.vlgmr.msrb.gmra.mxu0 %vm65_vm0, %v176_v35 }
 0x257   :  { %418 = vmatpush.bf16.msra.mxu3 %v1373_v26  ;;  %453 = vmatpush.bf16.msrb.mxu0 %v1316_v0 }
 0x25b   :  { %419 = vmatpush.bf16.msra.mxu3 %v1388_v29  ;;  %454 = vmatpush.bf16.msrb.mxu0 %v1326_v2 }
 0x2d3   :  { %v240_v38 = vpop.f32.mrf.mxu0 }
 0x2d9   :  { %v201_v40 = vpop.f32.mrf.mxu3 }
 0x2da   :  { %v202_v41 = vadd.f32 %v201_v40, %v170_v36 }
 0x2db   :  { %v242_v42 = vpop.f32.mrf.mxu0 }
 0x2dc   :  { %v205_v43 = vadd.f32 %v1413_v39, %v202_v41 }
 0x2de   :  { %1181 = vtanh.f32 %v205_v43 }
 0x2e1   :  { %v203_v44 = vpop.f32.mrf.mxu3 }
 0x2e4   :  { %v1182_v45 = vpop.eup %1181 }
 0x2e5   :  { %215 = vrot.lane.b32.xlu2 %v1182_v45, %s1268_s13  ;;  %v207_v46 = vmul.f32 0.5, %v1182_v45 }
 0x2e7   :  { %v208_v47 = vadd.f32 0.5, %v207_v46 }
 0x2e9   :  { %v213_v51 = vmul.f32 %v211_v50, %v208_v47 }
 0x33f   :  { %v216_v48 = vpop.permute.xlu2 %215 }
 0x340   :  { %v218_v49 = vmul.f32 %v216_v48, %v208_v47 }
 0x342   :  { %220 = vrot.lane.b32.xlu1 %v218_v49, %s1269_s16 }
 0x3b4   :  { %v221_v52 = vpop.permute.xlu1 %220 }
 0x3b5   :  { %v223_v53 = vadd.f32 %v221_v52, %v213_v51 }
 0x3b7   :  { %1183 = vtanh.f32 %v223_v53 }
 0x3bd   :  { %v1184_v54 = vpop.eup %1183 }
 0x3be   :  { %226 = vrot.lane.b32.xlu2 %v1184_v54, %s1268_s13 }
 0x418   :  { %v227_v55 = vpop.permute.xlu2 %226 }
 0x419   :  { %v1419_v56 = vmul.f32 %v227_v55, %v208_v47 }
 0x41b   :  { %v230_v57 = vpack.c.bf16 %v1419_v56, %v1419_v56 }
 0x41d   :  { %245 = vrot.lane.b32.xlu0 %v230_v57, %s1269_s16 }
 0x48f   :  { %v246_v58 = vpop.permute.xlu0 %245 }
 0x490   :  { %1122 = vmatmul.msk.bf16.vlgmr.msrb.gmra.mxu1 %vm65_vm0, %v246_v58  ;;  %1123 = vmatmul.msk.bf16.vlgmr.msrb.gmra.mxu2 %vm65_vm0, %v246_v58 }
 0x491   :  { %472 = vmatpush.bf16.msrb.mxu1 %v1321_v1  ;;  %507 = vmatpush.bf16.msrb.mxu2 %v1368_v25 }
 0x495   :  { %473 = vmatpush.bf16.msrb.mxu1 %v1331_v3  ;;  %508 = vmatpush.bf16.msrb.mxu2 %v1379_v27 }
 0x50d   :  { %v259_v59 = vpop.f32.mrf.mxu1 }
 0x50e   :  { %v260_v60 = vadd.f32 %v259_v59, %v240_v38 }
 0x510   :  { %v263_v61 = vadd.f32 %v1352_v7, %v260_v60 }
 0x512   :  { %1185 = vtanh.f32 %v263_v61 }
 0x513   :  { %v294_v62 = vpop.f32.mrf.mxu2 }
 0x515   :  { %v261_v63 = vpop.f32.mrf.mxu1 }
 0x518   :  { %v1186_v4 = vpop.eup %1185 }
 0x519   :  { %269 = vrot.lane.b32.xlu1 %v1186_v4, %s1268_s13  ;;  %v265_v6 = vmul.f32 0.5, %v1186_v4 }
 0x51b   :  { %v296_v5 = vpop.f32.mrf.mxu2  ;;  %v266_v8 = vadd.f32 0.5, %v265_v6 }
 0x51d   :  { %v267_v11 = vmul.f32 %v266_v8, %v1361_v23 }
 0x58b   :  { %v270_v9 = vpop.permute.xlu1 %269 }
 0x58c   :  { %v272_v10 = vmul.f32 %v270_v9, %v266_v8 }
 0x58e   :  { %274 = vrot.lane.b32.xlu2 %v272_v10, %s1269_s16 }
 0x5e8   :  { %v275_v12 = vpop.permute.xlu2 %274 }
 0x5e9   :  { %v277_v13 = vadd.f32 %v275_v12, %v267_v11 }
 0x5eb   :  { %1187 = vtanh.f32 %v277_v13 }
 0x5f1   :  { %v1188_v14 = vpop.eup %1187 }
 0x5f2   :  { %280 = vrot.lane.b32.xlu0 %v1188_v14, %s1268_s13 }
 0x664   :  { %v281_v15 = vpop.permute.xlu0 %280 }
 0x665   :  { %v283_v16 = vmul.f32 %v281_v15, %v266_v8 }
 0x667   :  { %v284_v17 = vpack.c.bf16 %v283_v16, %v283_v16 }
 0x669   :  { %299 = vrot.lane.b32.xlu1 %v284_v17, %s1269_s16 }
 0x6db   :  { %v300_v18 = vpop.permute.xlu1 %299 }
 0x6dc   :  { %1124 = vmatmul.msk.bf16.vlgmr.msrb.gmra.mxu3 %vm65_vm0, %v300_v18  ;;  %1125 = vmatmul.msk.bf16.vlgmr.msra.gmra.mxu0 %vm65_vm0, %v300_v18 }
 0x6dd   :  { %526 = vmatpush.bf16.msrb.mxu3 %v1373_v26  ;;  %561 = vmatpush.bf16.msra.mxu0 %v1316_v0 }
 0x6e1   :  { %527 = vmatpush.bf16.msrb.mxu3 %v1388_v29  ;;  %562 = vmatpush.bf16.msra.mxu0 %v1326_v2 }
 0x759   :  { %v348_v19 = vpop.f32.mrf.mxu0 }
 0x75f   :  { %v313_v20 = vpop.f32.mrf.mxu3 }
 0x760   :  { %v314_v21 = vadd.f32 %v313_v20, %v294_v62 }
 0x761   :  { %v350_v22 = vpop.f32.mrf.mxu0 }
 0x762   :  { %v317_v23 = vadd.f32 %v1413_v39, %v314_v21 }
 0x764   :  { %1189 = vtanh.f32 %v317_v23 }
 0x767   :  { %v315_v24 = vpop.f32.mrf.mxu3 }
 0x76a   :  { %v1190_v28 = vpop.eup %1189 }
 0x76b   :  { %323 = vrot.lane.b32.xlu2 %v1190_v28, %s1268_s13  ;;  %v319_v30 = vmul.f32 0.5, %v1190_v28 }
 0x76d   :  { %v320_v31 = vadd.f32 0.5, %v319_v30 }
 0x76f   :  { %v321_v34 = vmul.f32 %v320_v31, %v223_v53 }
 0x7c5   :  { %v324_v32 = vpop.permute.xlu2 %323 }
 0x7c6   :  { %v326_v33 = vmul.f32 %v324_v32, %v320_v31 }
 0x7c8   :  { %328 = vrot.lane.b32.xlu0 %v326_v33, %s1269_s16 }
 0x83a   :  { %v329_v35 = vpop.permute.xlu0 %328 }
 0x83b   :  { %v331_v36 = vadd.f32 %v329_v35, %v321_v34 }
 0x83d   :  { %1191 = vtanh.f32 %v331_v36 }
 0x843   :  { %v1192_v37 = vpop.eup %1191 }
 0x844   :  { %334 = vrot.lane.b32.xlu1 %v1192_v37, %s1268_s13 }
 0x8b6   :  { %v335_v38 = vpop.permute.xlu1 %334 }
 0x8b7   :  { %v1446_v40 = vmul.f32 %v335_v38, %v320_v31 }
 0x8b9   :  { %v338_v41 = vpack.c.bf16 %v1446_v40, %v1446_v40 }
 0x8bb   :  { %353 = vrot.lane.b32.xlu2 %v338_v41, %s1269_s16 }
 0x915   :  { %v354_v42 = vpop.permute.xlu2 %353 }
 0x916   :  { %1126 = vmatmul.msk.bf16.vlgmr.msra.gmra.mxu1 %vm65_vm0, %v354_v42  ;;  %1127 = vmatmul.msk.bf16.vlgmr.msra.gmra.mxu2 %vm65_vm0, %v354_v42 }
 0x917   :  { %580 = vmatpush.bf16.msra.mxu1 %v1321_v1  ;;  %615 = vmatpush.bf16.msra.mxu2 %v1368_v25 }
 0x91b   :  { %581 = vmatpush.bf16.msra.mxu1 %v1331_v3  ;;  %616 = vmatpush.bf16.msra.mxu2 %v1379_v27 }
 0x993   :  { %v367_v43 = vpop.f32.mrf.mxu1 }
 0x994   :  { %v368_v44 = vadd.f32 %v367_v43, %v348_v19 }
 0x996   :  { %v371_v45 = vadd.f32 %v1352_v7, %v368_v44 }
 0x998   :  { %1193 = vtanh.f32 %v371_v45 }
 0x999   :  { %v402_v46 = vpop.f32.mrf.mxu2 }
 0x99b   :  { %v369_v47 = vpop.f32.mrf.mxu1 }
 0x99e   :  { %v1194_v48 = vpop.eup %1193 }
 0x99f   :  { %377 = vrot.lane.b32.xlu0 %v1194_v48, %s1268_s13  ;;  %v373_v50 = vmul.f32 0.5, %v1194_v48 }
 0x9a1   :  { %v404_v49 = vpop.f32.mrf.mxu2  ;;  %v374_v51 = vadd.f32 0.5, %v373_v50 }
 0x9a3   :  { %v375_v54 = vmul.f32 %v374_v51, %v277_v13 }
 0xa11   :  { %v378_v52 = vpop.permute.xlu0 %377 }
 0xa12   :  { %v380_v53 = vmul.f32 %v378_v52, %v374_v51 }
 0xa14   :  { %382 = vrot.lane.b32.xlu1 %v380_v53, %s1269_s16 }
 0xa86   :  { %v383_v55 = vpop.permute.xlu1 %382 }
 0xa87   :  { %v385_v57 = vadd.f32 %v383_v55, %v375_v54 }
 0xa89   :  { %1195 = vtanh.f32 %v385_v57 }
 0xa8f   :  { %v1196_v58 = vpop.eup %1195 }
 0xa90   :  { %388 = vrot.lane.b32.xlu2 %v1196_v58, %s1268_s13 }
 0xaea   :  { %v389_v59 = vpop.permute.xlu2 %388 }
 0xaeb   :  { %v391_v60 = vmul.f32 %v389_v59, %v374_v51 }
 0xaed   :  { %v392_v61 = vpack.c.bf16 %v391_v60, %v391_v60 }
 0xaef   :  { %407 = vrot.lane.b32.xlu0 %v392_v61, %s1269_s16 }
 0xb61   :  { %v408_v62 = vpop.permute.xlu0 %407 }
 0xb62   :  { %1128 = vmatmul.msk.bf16.vlgmr.msra.gmra.mxu3 %vm65_vm0, %v408_v62  ;;  %1129 = vmatmul.msk.bf16.vlgmr.msrb.gmra.mxu0 %vm65_vm0, %v408_v62 }
 0xb63   :  { %634 = vmatpush.bf16.msra.mxu3 %v1373_v26  ;;  %669 = vmatpush.bf16.msrb.mxu0 %v1316_v0 }
 0xb67   :  { %635 = vmatpush.bf16.msra.mxu3 %v1388_v29  ;;  %670 = vmatpush.bf16.msrb.mxu0 %v1326_v2 }
 0xbdf   :  { %v456_v63 = vpop.f32.mrf.mxu0 }
 0xbe5   :  { %v421_v4 = vpop.f32.mrf.mxu3 }
 0xbe6   :  { %v422_v5 = vadd.f32 %v421_v4, %v402_v46 }
 0xbe7   :  { %v458_v6 = vpop.f32.mrf.mxu0 }
 0xbe8   :  { %v425_v8 = vadd.f32 %v1413_v39, %v422_v5 }
 0xbea   :  { %1197 = vtanh.f32 %v425_v8  ;;  %v999_v8 = vrot.slane %v1446_v40, 4 }
 0xbed   :  { %v423_v9 = vpop.f32.mrf.mxu3 }
 0xbee   :  { %v1002_v9 = vrot.slane %v1419_v56, 2 }
 0xbf0   :  { %v1198_v10 = vpop.eup %1197 }
 0xbf1   :  { %431 = vrot.lane.b32.xlu1 %v1198_v10, %s1268_s13  ;;  %v427_v11 = vmul.f32 0.5, %v1198_v10 }
 0xbf3   :  { %v428_v12 = vadd.f32 0.5, %v427_v11 }
 0xbf5   :  { %v429_v15 = vmul.f32 %v428_v12, %v331_v36 }
 0xc63   :  { %v432_v13 = vpop.permute.xlu1 %431 }
 0xc64   :  { %v434_v14 = vmul.f32 %v432_v13, %v428_v12 }
 0xc66   :  { %436 = vrot.lane.b32.xlu2 %v434_v14, %s1269_s16 }
 0xcc0   :  { %v437_v16 = vpop.permute.xlu2 %436 }
 0xcc1   :  { %v439_v17 = vadd.f32 %v437_v16, %v429_v15 }
 0xcc3   :  { %1199 = vtanh.f32 %v439_v17 }
 0xcc9   :  { %v1200_v18 = vpop.eup %1199 }
 0xcca   :  { %442 = vrot.lane.b32.xlu0 %v1200_v18, %s1268_s13 }
 0xd3c   :  { %v443_v19 = vpop.permute.xlu0 %442 }
 0xd3d   :  { %v1472_v20 = vmul.f32 %v443_v19, %v428_v12 }
 0xd3f   :  { %v446_v21 = vpack.c.bf16 %v1472_v20, %v1472_v20  ;;  %v996_v5 = vrot.slane %v1472_v20, 6 }
 0xd41   :  { %461 = vrot.lane.b32.xlu1 %v446_v21, %s1269_s16 }
 0xdb3   :  { %v462_v22 = vpop.permute.xlu1 %461 }
 0xdb4   :  { %1130 = vmatmul.msk.bf16.vlgmr.msrb.gmra.mxu1 %vm65_vm0, %v462_v22  ;;  %1131 = vmatmul.msk.bf16.vlgmr.msrb.gmra.mxu2 %vm65_vm0, %v462_v22 }
 0xdb5   :  { %688 = vmatpush.bf16.msrb.mxu1 %v1321_v1  ;;  %723 = vmatpush.bf16.msrb.mxu2 %v1368_v25 }
 0xdb9   :  { %689 = vmatpush.bf16.msrb.mxu1 %v1331_v3  ;;  %724 = vmatpush.bf16.msrb.mxu2 %v1379_v27 }
 0xe31   :  { %v475_v23 = vpop.f32.mrf.mxu1 }
 0xe32   :  { %v476_v24 = vadd.f32 %v475_v23, %v456_v63 }
 0xe34   :  { %v479_v28 = vadd.f32 %v1352_v7, %v476_v24 }
 0xe36   :  { %1201 = vtanh.f32 %v479_v28 }
 0xe37   :  { %v510_v30 = vpop.f32.mrf.mxu2 }
 0xe39   :  { %v477_v31 = vpop.f32.mrf.mxu1 }
 0xe3c   :  { %v1202_v32 = vpop.eup %1201 }
 0xe3d   :  { %485 = vrot.lane.b32.xlu2 %v1202_v32, %s1268_s13  ;;  %v481_v34 = vmul.f32 0.5, %v1202_v32 }
 0xe3f   :  { %v512_v33 = vpop.f32.mrf.mxu2  ;;  %v482_v35 = vadd.f32 0.5, %v481_v34 }
 0xe41   :  { %v483_v38 = vmul.f32 %v482_v35, %v385_v57 }
 0xe97   :  { %v486_v36 = vpop.permute.xlu2 %485 }
 0xe98   :  { %v488_v37 = vmul.f32 %v486_v36, %v482_v35 }
 0xe9a   :  { %490 = vrot.lane.b32.xlu0 %v488_v37, %s1269_s16 }
 0xf0c   :  { %v491_v41 = vpop.permute.xlu0 %490 }
 0xf0d   :  { %v1486_v42 = vadd.f32 %v491_v41, %v483_v38 }
 0xf0f   :  { %1203 = vtanh.f32 %v1486_v42 }
 0xf15   :  { %v1204_v43 = vpop.eup %1203 }
 0xf16   :  { %496 = vrot.lane.b32.xlu1 %v1204_v43, %s1268_s13 }
 0xf88   :  { %v497_v44 = vpop.permute.xlu1 %496 }
 0xf89   :  { %v499_v45 = vmul.f32 %v497_v44, %v482_v35 }
 0xf8b   :  { %v500_v46 = vpack.c.bf16 %v499_v45, %v499_v45 }
 0xf8d   :  { %515 = vrot.lane.b32.xlu2 %v500_v46, %s1269_s16 }
 0xfe7   :  { %v516_v47 = vpop.permute.xlu2 %515 }
 0xfe8   :  { %1132 = vmatmul.msk.bf16.vlgmr.msrb.gmra.mxu3 %vm65_vm0, %v516_v47  ;;  %1133 = vmatmul.msk.bf16.vlgmr.msra.gmra.mxu0 %vm65_vm0, %v516_v47 }
 0xfe9   :  { %742 = vmatpush.bf16.msrb.mxu3 %v1373_v26  ;;  %777 = vmatpush.bf16.msra.mxu0 %v1316_v0 }
 0xfed   :  { %743 = vmatpush.bf16.msrb.mxu3 %v1388_v29  ;;  %778 = vmatpush.bf16.msra.mxu0 %v1326_v2 }
0x1065   :  { %v564_v48 = vpop.f32.mrf.mxu0 }
0x106b   :  { %v529_v49 = vpop.f32.mrf.mxu3 }
0x106c   :  { %v530_v50 = vadd.f32 %v529_v49, %v510_v30 }
0x106d   :  { %v566_v51 = vpop.f32.mrf.mxu0 }
0x106e   :  { %v533_v52 = vadd.f32 %v1413_v39, %v530_v50 }
0x1070   :  { %1205 = vtanh.f32 %v533_v52 }
0x1073   :  { %v531_v53 = vpop.f32.mrf.mxu3 }
0x1076   :  { %v1206_v54 = vpop.eup %1205 }
0x1077   :  { %539 = vrot.lane.b32.xlu0 %v1206_v54, %s1268_s13  ;;  %v535_v55 = vmul.f32 0.5, %v1206_v54 }
0x1079   :  { %v536_v57 = vadd.f32 0.5, %v535_v55 }
0x107b   :  { %v537_v60 = vmul.f32 %v536_v57, %v439_v17 }
0x10e9   :  { %v540_v58 = vpop.permute.xlu0 %539 }
0x10ea   :  { %v542_v59 = vmul.f32 %v540_v58, %v536_v57 }
0x10ec   :  { %544 = vrot.lane.b32.xlu1 %v542_v59, %s1269_s16 }
0x115e   :  { %v545_v61 = vpop.permute.xlu1 %544 }
0x115f   :  { %v1500_v62 = vadd.f32 %v545_v61, %v537_v60 }
0x1161   :  { %1207 = vtanh.f32 %v1500_v62 }
0x1167   :  { %v1208_v63 = vpop.eup %1207 }
0x1168   :  { %550 = vrot.lane.b32.xlu2 %v1208_v63, %s1268_s13 }
0x11c2   :  { %v551_v4 = vpop.permute.xlu2 %550 }
0x11c3   :  { %v553_v6 = vmul.f32 %v551_v4, %v536_v57 }
0x11c5   :  { %v554_v10 = vpack.c.bf16 %v553_v6, %v553_v6  ;;  %v1010_v11 = vsel %vm1004_vm1, %v553_v6, %v996_v5 }
0x11c6   :  { %v1011_v12 = vsel %vm1006_vm2, %v1010_v11, %v999_v8 }
0x11c7   :  { %569 = vrot.lane.b32.xlu0 %v554_v10, %s1269_s16  ;;  %v1511_v13 = vsel %vm1008_vm3, %v1011_v12, %v1002_v9 }
0x1239   :  { %v570_v14 = vpop.permute.xlu0 %569 }
0x123a   :  { %1134 = vmatmul.msk.bf16.vlgmr.msra.gmra.mxu1 %vm65_vm0, %v570_v14  ;;  %1135 = vmatmul.msk.bf16.vlgmr.msra.gmra.mxu2 %vm65_vm0, %v570_v14 }
0x123b   :  { %796 = vmatpush.bf16.msra.mxu1 %v1321_v1  ;;  %831 = vmatpush.bf16.msra.mxu2 %v1368_v25 }
0x123f   :  { %797 = vmatpush.bf16.msra.mxu1 %v1331_v3  ;;  %832 = vmatpush.bf16.msra.mxu2 %v1379_v27 }
0x12b7   :  { %v583_v56 = vpop.f32.mrf.mxu1 }
0x12b8   :  { %v584_v40 = vadd.f32 %v583_v56, %v564_v48 }
0x12ba   :  { %v587_v15 = vadd.f32 %v1352_v7, %v584_v40 }
0x12bc   :  { %1209 = vtanh.f32 %v587_v15 }
0x12bd   :  { %v618_v16 = vpop.f32.mrf.mxu2 }
0x12bf   :  { %v585_v17 = vpop.f32.mrf.mxu1 }
0x12c2   :  { %v1210_v18 = vpop.eup %1209 }
0x12c3   :  { %593 = vrot.lane.b32.xlu1 %v1210_v18, %s1268_s13  ;;  %v589_v20 = vmul.f32 0.5, %v1210_v18 }
0x12c5   :  { %v620_v19 = vpop.f32.mrf.mxu2  ;;  %v590_v21 = vadd.f32 0.5, %v589_v20 }
0x12c7   :  { %v591_v24 = vmul.f32 %v590_v21, %v1486_v42 }
0x1335   :  { %v594_v22 = vpop.permute.xlu1 %593 }
0x1336   :  { %v596_v23 = vmul.f32 %v594_v22, %v590_v21 }
0x1338   :  { %598 = vrot.lane.b32.xlu2 %v596_v23, %s1269_s16 }
0x1392   :  { %v599_v28 = vpop.permute.xlu2 %598 }
0x1393   :  { %v601_v30 = vadd.f32 %v599_v28, %v591_v24 }
0x1395   :  { %1211 = vtanh.f32 %v601_v30 }
0x139b   :  { %v1212_v31 = vpop.eup %1211 }
0x139c   :  { %604 = vrot.lane.b32.xlu0 %v1212_v31, %s1268_s13 }
0x140e   :  { %v605_v32 = vpop.permute.xlu0 %604 }
0x140f   :  { %v607_v33 = vmul.f32 %v605_v32, %v590_v21 }
0x1411   :  { %v608_v34 = vpack.c.bf16 %v607_v33, %v607_v33 }
0x1413   :  { %623 = vrot.lane.b32.xlu1 %v608_v34, %s1269_s16 }
0x1485   :  { %v624_v35 = vpop.permute.xlu1 %623 }
0x1486   :  { %1136 = vmatmul.msk.bf16.vlgmr.msra.gmra.mxu3 %vm65_vm0, %v624_v35  ;;  %1137 = vmatmul.msk.bf16.vlgmr.msrb.gmra.mxu0 %vm65_vm0, %v624_v35 }
0x1487   :  { %850 = vmatpush.bf16.msra.mxu3 %v1373_v26  ;;  %885 = vmatpush.bf16.msrb.mxu0 %v1316_v0 }
0x148b   :  { %851 = vmatpush.bf16.msra.mxu3 %v1388_v29  ;;  %886 = vmatpush.bf16.msrb.mxu0 %v1326_v2 }
0x1503   :  { %v672_v36 = vpop.f32.mrf.mxu0 }
0x1509   :  { %v637_v37 = vpop.f32.mrf.mxu3 }
0x150a   :  { %v638_v38 = vadd.f32 %v637_v37, %v618_v16 }
0x150b   :  { %v674_v41 = vpop.f32.mrf.mxu0 }
0x150c   :  { %v641_v42 = vadd.f32 %v1413_v39, %v638_v38 }
0x150e   :  { %1213 = vtanh.f32 %v641_v42 }
0x1511   :  { %v639_v43 = vpop.f32.mrf.mxu3 }
0x1514   :  { %v1214_v44 = vpop.eup %1213 }
0x1515   :  { %647 = vrot.lane.b32.xlu2 %v1214_v44, %s1268_s13  ;;  %v643_v45 = vmul.f32 0.5, %v1214_v44 }
0x1517   :  { %v644_v46 = vadd.f32 0.5, %v643_v45 }
0x1519   :  { %v645_v0 = vmul.f32 %v644_v46, %v1500_v62 }
0x156f   :  { %v648_v47 = vpop.permute.xlu2 %647 }
0x1570   :  { %v650_v48 = vmul.f32 %v648_v47, %v644_v46 }
0x1572   :  { %652 = vrot.lane.b32.xlu0 %v650_v48, %s1269_s16 }
0x15e4   :  { %v653_v2 = vpop.permute.xlu0 %652 }
0x15e5   :  { %v655_v49 = vadd.f32 %v653_v2, %v645_v0 }
0x15e7   :  { %1215 = vtanh.f32 %v655_v49 }
0x15ed   :  { %v1216_v50 = vpop.eup %1215 }
0x15ee   :  { %658 = vrot.lane.b32.xlu1 %v1216_v50, %s1268_s13 }
0x1660   :  { %v659_v51 = vpop.permute.xlu1 %658 }
0x1661   :  { %v1536_v52 = vmul.f32 %v659_v51, %v644_v46 }
0x1663   :  { %v662_v53 = vpack.c.bf16 %v1536_v52, %v1536_v52 }
0x1665   :  { %677 = vrot.lane.b32.xlu2 %v662_v53, %s1269_s16 }
0x16bf   :  { %v678_v54 = vpop.permute.xlu2 %677 }
0x16c0   :  { %1138 = vmatmul.msk.bf16.vlgmr.msrb.gmra.mxu1 %vm65_vm0, %v678_v54  ;;  %1139 = vmatmul.msk.bf16.vlgmr.msrb.gmra.mxu2 %vm65_vm0, %v678_v54 }
0x16c1   :  { %904 = vmatpush.bf16.msrb.mxu1 %v1321_v1  ;;  %939 = vmatpush.bf16.msrb.mxu2 %v1368_v25 }
0x16c5   :  { %905 = vmatpush.bf16.msrb.mxu1 %v1331_v3  ;;  %940 = vmatpush.bf16.msrb.mxu2 %v1379_v27 }
0x173d   :  { %v691_v55 = vpop.f32.mrf.mxu1 }
0x173e   :  { %v692_v57 = vadd.f32 %v691_v55, %v672_v36 }
0x1740   :  { %v695_v58 = vadd.f32 %v1352_v7, %v692_v57 }
0x1742   :  { %1217 = vtanh.f32 %v695_v58 }
0x1743   :  { %v726_v59 = vpop.f32.mrf.mxu2 }
0x1745   :  { %v693_v60 = vpop.f32.mrf.mxu1 }
0x1748   :  { %v1218_v61 = vpop.eup %1217 }
0x1749   :  { %701 = vrot.lane.b32.xlu0 %v1218_v61, %s1268_s13  ;;  %v697_v63 = vmul.f32 0.5, %v1218_v61 }
0x174b   :  { %v728_v62 = vpop.f32.mrf.mxu2  ;;  %v698_v4 = vadd.f32 0.5, %v697_v63 }
0x174d   :  { %v699_v3 = vmul.f32 %v698_v4, %v601_v30 }
0x17bb   :  { %v702_v1 = vpop.permute.xlu0 %701 }
0x17bc   :  { %v704_v5 = vmul.f32 %v702_v1, %v698_v4 }
0x17be   :  { %706 = vrot.lane.b32.xlu1 %v704_v5, %s1269_s16 }
0x1830   :  { %v707_v25 = vpop.permute.xlu1 %706 }
0x1831   :  { %v709_v27 = vadd.f32 %v707_v25, %v699_v3 }
0x1833   :  { %1219 = vtanh.f32 %v709_v27 }
0x1839   :  { %v1220_v6 = vpop.eup %1219 }
0x183a   :  { %712 = vrot.lane.b32.xlu2 %v1220_v6, %s1268_s13 }
0x1894   :  { %v713_v8 = vpop.permute.xlu2 %712 }
0x1895   :  { %v715_v9 = vmul.f32 %v713_v8, %v698_v4 }
0x1897   :  { %v716_v10 = vpack.c.bf16 %v715_v9, %v715_v9 }
0x1899   :  { %731 = vrot.lane.b32.xlu0 %v716_v10, %s1269_s16 }
0x190b   :  { %v732_v11 = vpop.permute.xlu0 %731 }
0x190c   :  { %1140 = vmatmul.msk.bf16.vlgmr.msrb.gmra.mxu3 %vm65_vm0, %v732_v11  ;;  %1141 = vmatmul.msk.bf16.vlgmr.msra.gmra.mxu0 %vm65_vm0, %v732_v11 }
0x190d   :  { %958 = vmatpush.bf16.msrb.mxu3 %v1373_v26 }
0x1911   :  { %959 = vmatpush.bf16.msrb.mxu3 %v1388_v29 }
0x1989   :  { %v780_v12 = vpop.f32.mrf.mxu0 }
0x198f   :  { %v745_v14 = vpop.f32.mrf.mxu3 }
0x1990   :  { %v746_v56 = vadd.f32 %v745_v14, %v726_v59 }
0x1991   :  { %v782_v40 = vpop.f32.mrf.mxu0 }
0x1992   :  { %v749_v15 = vadd.f32 %v1413_v39, %v746_v56 }
0x1994   :  { %1221 = vtanh.f32 %v749_v15 }
0x1997   :  { %v747_v16 = vpop.f32.mrf.mxu3 }
0x199a   :  { %v1222_v17 = vpop.eup %1221 }
0x199b   :  { %755 = vrot.lane.b32.xlu1 %v1222_v17, %s1268_s13  ;;  %v751_v18 = vmul.f32 0.5, %v1222_v17 }
0x199d   :  { %v752_v19 = vadd.f32 0.5, %v751_v18 }
0x199f   :  { %v753_v26 = vmul.f32 %v752_v19, %v655_v49 }
0x1a0d   :  { %v756_v20 = vpop.permute.xlu1 %755 }
0x1a0e   :  { %v758_v21 = vmul.f32 %v756_v20, %v752_v19 }
0x1a10   :  { %760 = vrot.lane.b32.xlu2 %v758_v21, %s1269_s16 }
0x1a6a   :  { %v761_v22 = vpop.permute.xlu2 %760 }
0x1a6b   :  { %v763_v29 = vadd.f32 %v761_v22, %v753_v26 }
0x1a6d   :  { %1223 = vtanh.f32 %v763_v29 }
0x1a73   :  { %v1224_v23 = vpop.eup %1223 }
0x1a74   :  { %766 = vrot.lane.b32.xlu0 %v1224_v23, %s1268_s13 }
0x1ae6   :  { %v767_v24 = vpop.permute.xlu0 %766 }
0x1ae7   :  { %v1560_v28 = vmul.f32 %v767_v24, %v752_v19 }
0x1ae9   :  { %v770_v30 = vpack.c.bf16 %v1560_v28, %v1560_v28 }
0x1aeb   :  { %785 = vrot.lane.b32.xlu1 %v770_v30, %s1269_s16 }
0x1b5d   :  { %v786_v31 = vpop.permute.xlu1 %785 }
0x1b5e   :  { %1142 = vmatmul.msk.bf16.vlgmr.msra.gmra.mxu1 %vm65_vm0, %v786_v31  ;;  %1143 = vmatmul.msk.bf16.vlgmr.msra.gmra.mxu2 %vm65_vm0, %v786_v31 }
0x1bdb   :  { %v799_v32 = vpop.f32.mrf.mxu1 }
0x1bdc   :  { %v800_v33 = vadd.f32 %v799_v32, %v780_v12 }
0x1bde   :  { %v803_v34 = vadd.f32 %v1352_v7, %v800_v33 }
0x1be0   :  { %1225 = vtanh.f32 %v803_v34 }
0x1be1   :  { %v834_v35 = vpop.f32.mrf.mxu2 }
0x1be3   :  { %v801_v36 = vpop.f32.mrf.mxu1 }
0x1be6   :  { %v1226_v37 = vpop.eup %1225 }
0x1be7   :  { %809 = vrot.lane.b32.xlu2 %v1226_v37, %s1268_s13  ;;  %v805_v41 = vmul.f32 0.5, %v1226_v37 }
0x1be9   :  { %v836_v38 = vpop.f32.mrf.mxu2  ;;  %v806_v42 = vadd.f32 0.5, %v805_v41 }
0x1beb   :  { %v807_v45 = vmul.f32 %v806_v42, %v709_v27 }
0x1c41   :  { %v810_v43 = vpop.permute.xlu2 %809 }
0x1c42   :  { %v812_v44 = vmul.f32 %v810_v43, %v806_v42 }
0x1c44   :  { %814 = vrot.lane.b32.xlu0 %v812_v44, %s1269_s16  ;;  %v1166_v44 = vld [vmem:[%s1616_s5] sm:$0xff] }
0x1cb6   :  { %v815_v46 = vpop.permute.xlu0 %814 }
0x1cb7   :  { %v817_v47 = vadd.f32 %v815_v46, %v807_v45 }
0x1cb9   :  { %1227 = vtanh.f32 %v817_v47 }
0x1cbf   :  { %v1228_v48 = vpop.eup %1227 }
0x1cc0   :  { %820 = vrot.lane.b32.xlu1 %v1228_v48, %s1268_s13  ;;  %v990_v48 = vrot.slane %v1560_v28, 4 }
0x1d32   :  { %v821_v0 = vpop.permute.xlu1 %820 }
0x1d33   :  { %v823_v2 = vmul.f32 %v821_v0, %v806_v42  ;;  %v993_v0 = vrot.slane %v1536_v52, 2 }
0x1d35   :  { %v824_v49 = vpack.c.bf16 %v823_v2, %v823_v2 }
0x1d37   :  { %839 = vrot.lane.b32.xlu2 %v824_v49, %s1269_s16 }
0x1d91   :  { %v840_v50 = vpop.permute.xlu2 %839 }
0x1d92   :  { %1144 = vmatmul.msk.bf16.vlgmr.msra.gmra.mxu3 %vm65_vm0, %v840_v50  ;;  %1145 = vmatmul.msk.bf16.vlgmr.msrb.gmra.mxu0 %vm65_vm0, %v840_v50 }
0x1e0f   :  { %v888_v51 = vpop.f32.mrf.mxu0 }
0x1e15   :  { %v853_v53 = vpop.f32.mrf.mxu3 }
0x1e16   :  { %v854_v54 = vadd.f32 %v853_v53, %v834_v35 }
0x1e17   :  { %v890_v55 = vpop.f32.mrf.mxu0 }
0x1e18   :  { %v857_v57 = vadd.f32 %v1413_v39, %v854_v54  ;;  %v1176_v54 = vld [vmem:[%s1617_s6] ss:$0 sm:$0xff] }
0x1e1a   :  { %1229 = vtanh.f32 %v857_v57 }
0x1e1d   :  { %v855_v58 = vpop.f32.mrf.mxu3 }
0x1e20   :  { %v1230_v59 = vpop.eup %1229 }
0x1e21   :  { %863 = vrot.lane.b32.xlu0 %v1230_v59, %s1268_s13  ;;  %v859_v60 = vmul.f32 0.5, %v1230_v59 }
0x1e23   :  { %v860_v61 = vadd.f32 0.5, %v859_v60 }
0x1e25   :  { %v861_v4 = vmul.f32 %v860_v61, %v763_v29 }
0x1e93   :  { %v864_v62 = vpop.permute.xlu0 %863 }
0x1e94   :  { %v866_v63 = vmul.f32 %v864_v62, %v860_v61 }
0x1e96   :  { %868 = vrot.lane.b32.xlu1 %v866_v63, %s1269_s16 }
0x1f08   :  { %v869_v1 = vpop.permute.xlu1 %868 }
0x1f09   :  { %v871_v5 = vadd.f32 %v869_v1, %v861_v4 }
0x1f0b   :  { %1231 = vtanh.f32 %v871_v5 }
0x1f11   :  { %v1232_v3 = vpop.eup %1231 }
0x1f12   :  { %874 = vrot.lane.b32.xlu2 %v1232_v3, %s1268_s13 }
0x1f6c   :  { %v875_v25 = vpop.permute.xlu2 %874 }
0x1f6d   :  { %v877_v27 = vmul.f32 %v875_v25, %v860_v61 }
0x1f6f   :  { %v878_v6 = vpack.c.bf16 %v877_v27, %v877_v27  ;;  %v987_v46 = vrot.slane %v877_v27, 6 }
0x1f71   :  { %893 = vrot.lane.b32.xlu0 %v878_v6, %s1269_s16 }
0x1fe3   :  { %v894_v8 = vpop.permute.xlu0 %893 }
0x1fe4   :  { %1146 = vmatmul.msk.bf16.vlgmr.msrb.gmra.mxu1 %vm65_vm0, %v894_v8  ;;  %1147 = vmatmul.msk.bf16.vlgmr.msrb.gmra.mxu2 %vm65_vm0, %v894_v8 }
0x2061   :  { %v907_v9 = vpop.f32.mrf.mxu1 }
0x2062   :  { %v908_v10 = vadd.f32 %v907_v9, %v888_v51 }
0x2064   :  { %v911_v11 = vadd.f32 %v1352_v7, %v908_v10 }
0x2066   :  { %1233 = vtanh.f32 %v911_v11 }
0x2067   :  { %v942_v12 = vpop.f32.mrf.mxu2 }
0x2069   :  { %v909_v14 = vpop.f32.mrf.mxu1 }
0x206c   :  { %v1234_v56 = vpop.eup %1233 }
0x206d   :  { %917 = vrot.lane.b32.xlu1 %v1234_v56, %s1268_s13  ;;  %v913_v15 = vmul.f32 0.5, %v1234_v56 }
0x206f   :  { %v944_v40 = vpop.f32.mrf.mxu2  ;;  %v914_v16 = vadd.f32 0.5, %v913_v15 }
0x2071   :  { %v915_v19 = vmul.f32 %v914_v16, %v817_v47 }
0x20df   :  { %v918_v17 = vpop.permute.xlu1 %917 }
0x20e0   :  { %v920_v18 = vmul.f32 %v918_v17, %v914_v16 }
0x20e2   :  { %922 = vrot.lane.b32.xlu2 %v920_v18, %s1269_s16 }
0x213c   :  { %v923_v20 = vpop.permute.xlu2 %922 }
0x213d   :  { %v925_v21 = vadd.f32 %v923_v20, %v915_v19 }
0x213f   :  { %1235 = vtanh.f32 %v925_v21 }
0x2145   :  { %v1236_v26 = vpop.eup %1235 }
0x2146   :  { %928 = vrot.lane.b32.xlu0 %v1236_v26, %s1268_s13 }
0x21b8   :  { %v929_v7 = vpop.permute.xlu0 %928 }
0x21b9   :  { %v931_v22 = vmul.f32 %v929_v7, %v914_v16 }
0x21bb   :  { %v932_v29 = vpack.c.bf16 %v931_v22, %v931_v22 }
0x21bd   :  { %947 = vrot.lane.b32.xlu1 %v932_v29, %s1269_s16 }
0x222f   :  { %v948_v23 = vpop.permute.xlu1 %947 }
0x2230   :  { %1148 = vmatmul.msk.bf16.vlgmr.msrb.gmra.mxu3 %vm65_vm0, %v948_v23 }
0x22b3   :  { %v961_v24 = vpop.f32.mrf.mxu3 }
0x22b4   :  { %v962_v30 = vadd.f32 %v961_v24, %v942_v12 }
0x22b6   :  { %v965_v31 = vadd.f32 %v1413_v39, %v962_v30  ;;  %v1167_v39 = vld [vmem:[%s1616_s5 + $0x8] sm:$0xff] }
0x22b7   :  { %1046 = vmatpush.bf16.msra.mxu0 %v1167_v39 }
0x22b8   :  { %1237 = vtanh.f32 %v965_v31 }
0x22bb   :  { %v963_v32 = vpop.f32.mrf.mxu3  ;;  %1047 = vmatpush.bf16.msra.mxu0 %v1166_v44 }
0x22be   :  { %v1238_v33 = vpop.eup %1237 }
0x22bf   :  { %971 = vrot.lane.b32.xlu2 %v1238_v33, %s1268_s13  ;;  %v967_v34 = vmul.f32 0.5, %v1238_v33 }
0x22c1   :  { %v968_v35 = vadd.f32 0.5, %v967_v34 }
0x22c3   :  { %v969_v38 = vmul.f32 %v968_v35, %v871_v5 }
0x2319   :  { %v972_v36 = vpop.permute.xlu2 %971 }
0x231a   :  { %v974_v37 = vmul.f32 %v972_v36, %v968_v35 }
0x231c   :  { %976 = vrot.lane.b32.xlu0 %v974_v37, %s1269_s16 }
0x238e   :  { %v977_v41 = vpop.permute.xlu0 %976 }
0x238f   :  { %v979_v42 = vadd.f32 %v977_v41, %v969_v38 }
0x2391   :  { %1239 = vtanh.f32 %v979_v42 }
0x2397   :  { %v1240_v43 = vpop.eup %1239 }
0x2398   :  { %982 = vrot.lane.b32.xlu1 %v1240_v43, %s1268_s13  ;;  %s1271_s13 = smov 128  }
0x240a   :  { %v983_v45 = vpop.permute.xlu1 %982 }
0x240b   :  { %v985_v47 = vmul.f32 %v983_v45, %v968_v35 }
0x240d   :  { %v1005_v2 = vsel %vm1004_vm1, %v985_v47, %v987_v46 }
0x240e   :  { %v1007_v49 = vsel %vm1006_vm2, %v1005_v2, %v990_v48 }
0x240f   :  { %v1009_v50 = vsel %vm1008_vm3, %v1007_v49, %v993_v0 }
0x2410   :  { %v1013_v51 = vpack.c.bf16 %v1511_v13, %v1009_v50 }
0x2412   :  { %1023 = vrot.lane.b32.xlu2 %v1013_v51, %s1269_s16 }
0x246c   :  { %v1024_v53 = vpop.permute.xlu2 %1023 }
0x246d   :  { %1157 = vmatmul.msk.bf16.vlgmr.msra.gmra.mxu0 %vm65_vm0, %v1024_v53 }
0x24ea   :  { %v1049_v28 = vpop.f32.mrf.mxu0 }
0x24eb   :  { %v1050_v52 = vadd.f32 %v1176_v54, %v1049_v28 }
0x24ed   :  { %1055 = vst.msk [vmem:[#allocation2] sm:$0xff] %vm1054_vm4, %v1050_v52 }
0x24f2   :  { %v1051_v13 = vpop.f32.mrf.mxu0 }
0x24f3   :  { %v1052_v55 = vadd.f32 %v1176_v54, %v1051_v13 }
0x24f5   :  { %1056 = vst.msk [vmem:[#allocation2 + $0x8] sm:$0xff] %vm1054_vm4, %v1052_v55 }
0x24f6   :  { %1069 = dma.vmem_to_hbm [thread:$0]  %s1062_s9, 256, %s1064_s12, [#allocation3], %s1271_s13, %s1271_s13, %s1272_s14  }
0x24f7   :  { %1265 = dma.done.wait [#allocation3], 256  }
0x24f8   :  { %1266 = vsyncadd [#allocation3], 4294967040 }
0x24f9   :  { %1074 = vsyncpa [#allocation3], 1 }

</bundles_post_ra>
